<compile_context>
chip_gen: v7x
topology: tpu7x:2x2x1
jax: 0.10.0
libtpu: 0.0.40
codegen_flags: <defaults>
</compile_context>

<pallas_src>
import jax
import jax.numpy as jnp
from jax import lax
from jax.experimental import pallas as pl
from jax.experimental.pallas import tpu as pltpu


SUBLANE = 8  # f32 sublane granularity


# ----------------------------- Pallas kernel ------------------------------

def make_fused_lstm_kernel(num_layers, T, BP, H):
    """Builds a fused kernel: num_layers LSTM layers + FC on last timestep.

    Kernel args (positional):
      x_ref                    (T*BP, Din)  time-major, batch padded to BP
      [wih_l, whh_l, b_l] * L  (Din|H, 4H), (H, 4H), (1, 4H)  gate order [i,f,o,g]
      wfc_ref, bfc_ref         (H, O), (1, O)
      out_ref                  (BP, O)
    """
    THREE_H = 3 * H

    def lstm_layer(gx, whh, scale, offset, collect_seq):
        """Run the recurrence given pre-projected gate inputs gx: (T*BP, 4H)."""
        h = jnp.zeros((BP, H), jnp.float32)
        c = jnp.zeros((BP, H), jnp.float32)
        hs = []
        # Fully unrolled time loop (T is static & small): maximal scheduler
        # visibility; BP-row slices are tile-aligned (free views).
        for t in range(T):
            z = gx[t * BP:(t + 1) * BP, :] + jnp.dot(
                h, whh, preferred_element_type=jnp.float32)
            # ONE transcendental per step over the full (BP, 4H) vreg:
            #   lanes [0, 3H): sigmoid(z) = 0.5 * tanh(0.5 * z) + 0.5  (i, f, o)
            #   lanes [3H,4H): tanh(z)                                  (g)
            a = scale * jnp.tanh(z * scale) + offset
            i_g = a[:, 0:H]
            f_g = a[:, H:2 * H]
            o_g = a[:, 2 * H:3 * H]
            g_g = a[:, 3 * H:]
            c = f_g * c + i_g * g_g
            h = o_g * jnp.tanh(c)
            if collect_seq:
                hs.append(h)
        return h, hs

    def kernel(*args):
        x_ref = args[0]
        lstm_refs = args[1:1 + 3 * num_layers]
        wfc_ref = args[1 + 3 * num_layers]
        bfc_ref = args[2 + 3 * num_layers]
        out_ref = args[3 + 3 * num_layers]

        # Hoisted lane-position constants (JAX does not CSE broadcast_in_dim;
        # build once, reuse across all layers and timesteps).
        lane_lt_3h = lax.broadcasted_iota(jnp.int32, (BP, 4 * H), 1) < THREE_H
        scale = jnp.where(lane_lt_3h, jnp.float32(0.5), jnp.float32(1.0))
        offset = jnp.where(lane_lt_3h, jnp.float32(0.5), jnp.float32(0.0))

        # ---- layer 0: input projection as ONE matmul over all timesteps ----
        wih0 = lstm_refs[0][...]
        whh0 = lstm_refs[1][...]
        b0 = lstm_refs[2][...]
        gx = jnp.dot(x_ref[...], wih0, preferred_element_type=jnp.float32) + b0
        h, hs = lstm_layer(gx, whh0, scale, offset,
                           collect_seq=(num_layers > 1))

        # ---- layers 1..L-1: projection also as ONE stacked matmul per layer ----
        for layer in range(1, num_layers):
            wih = lstm_refs[3 * layer][...]
            whh = lstm_refs[3 * layer + 1][...]
            b = lstm_refs[3 * layer + 2][...]
            hs_stack = jnp.concatenate(hs, axis=0)          # (T*BP, H), 8-row aligned
            gx = jnp.dot(hs_stack, wih, preferred_element_type=jnp.float32) + b
            h, hs = lstm_layer(gx, whh, scale, offset,
                               collect_seq=(layer < num_layers - 1))

        # ---- fused FC epilogue on the final hidden state (no HBM round-trip)
        out_ref[...] = (jnp.dot(h, wfc_ref[...], preferred_element_type=jnp.float32)
                        + bfc_ref[...]).astype(out_ref.dtype)

    return kernel


# ------------------------------ JAX wrappers -------------------------------

_VMEM_SPEC = pl.BlockSpec(memory_space=pltpu.MemorySpace.VMEM)


def _reorder_gates(w, H):
    """Reorder packed-gate columns from PyTorch [i, f, g, o] to [i, f, o, g]."""
    return jnp.concatenate([w[:, :2 * H], w[:, 3 * H:4 * H], w[:, 2 * H:3 * H]],
                           axis=1)


def prepare_params(params):
    """One-time conversion to kernel layout: transposed weights, fused biases,
    gates reordered to [i, f, o, g]."""
    lstm = []
    for (w_ih, w_hh, b_ih, b_hh) in params["lstm"]:
        H = w_hh.shape[1]
        wih_t = _reorder_gates(jnp.asarray(w_ih, jnp.float32).T, H)   # (Din, 4H)
        whh_t = _reorder_gates(jnp.asarray(w_hh, jnp.float32).T, H)   # (H, 4H)
        b = _reorder_gates((b_ih + b_hh).astype(jnp.float32).reshape(1, 4 * H), H)
        lstm.append((wih_t, whh_t, b))
    w_fc, b_fc = params["fc"]
    return {
        "lstm": tuple(lstm),
        "fc": (jnp.asarray(w_fc, jnp.float32).T,               # (H, O)
               jnp.asarray(b_fc, jnp.float32).reshape(1, -1)), # (1, O)
    }


def _forward(x, kparams):
    """x: (B, T, input_dim) -> (B, output_dim). h0 = c0 = 0 (as in forward())."""
    B, T, Din = x.shape
    lstm_p = kparams["lstm"]
    w_fc, b_fc = kparams["fc"]
    num_layers = len(lstm_p)
    H = lstm_p[0][1].shape[0]       # whh_t: (H, 4H)
    O = w_fc.shape[1]

    # Pad batch to the f32 sublane granularity so per-timestep slabs are
    # tile-aligned inside the kernel.  Padded rows: zero input, zero state,
    # sliced off after the kernel (batch rows never mix in an LSTM).
    BP = max(SUBLANE, ((B + SUBLANE - 1) // SUBLANE) * SUBLANE)
    x_tm = jnp.transpose(x, (1, 0, 2)).astype(jnp.float32)       # (T, B, Din)
    x_tm = jnp.pad(x_tm, ((0, 0), (0, BP - B), (0, 0)))          # (T, BP, Din)
    x_flat = x_tm.reshape(T * BP, Din)

    flat_inputs = [x_flat]
    for (wih, whh, b) in lstm_p:
        flat_inputs += [wih, whh, b]
    flat_inputs += [w_fc, b_fc]

    kernel = make_fused_lstm_kernel(num_layers, T, BP, H)
    out = pl.pallas_call(
        kernel,
        out_shape=jax.ShapeDtypeStruct((BP, O), jnp.float32),
        in_specs=[_VMEM_SPEC] * len(flat_inputs),
        out_specs=_VMEM_SPEC,
    )(*flat_inputs)
    return out[:B]


lstm_model_forward = jax.jit(_forward)


# --------------------------- parameter creation ----------------------------

def init_params(key, input_dim, hidden_dim, num_layers, output_dim):
    """Deterministic init mirroring PyTorch's U(-1/sqrt(H), 1/sqrt(H))."""
    bound = 1.0 / jnp.sqrt(jnp.float32(hidden_dim))
    lstm = []
    for layer in range(num_layers):
        din = input_dim if layer == 0 else hidden_dim
        key, k1, k2, k3, k4 = jax.random.split(key, 5)
        w_ih = jax.random.uniform(k1, (4 * hidden_dim, din),
                                  jnp.float32, -bound, bound)
        w_hh = jax.random.uniform(k2, (4 * hidden_dim, hidden_dim),
                                  jnp.float32, -bound, bound)
        b_ih = jax.random.uniform(k3, (4 * hidden_dim,),
                                  jnp.float32, -bound, bound)
        b_hh = jax.random.uniform(k4, (4 * hidden_dim,),
                                  jnp.float32, -bound, bound)
        lstm.append((w_ih, w_hh, b_ih, b_hh))
    key, k1, k2 = jax.random.split(key, 3)
    fb = 1.0 / jnp.sqrt(jnp.float32(hidden_dim))
    w_fc = jax.random.uniform(k1, (output_dim, hidden_dim), jnp.float32, -fb, fb)
    b_fc = jax.random.uniform(k2, (output_dim,), jnp.float32, -fb, fb)
    return {"lstm": tuple(lstm), "fc": (w_fc, b_fc)}


# ---------------------------- pure-JAX reference ---------------------------

def reference_forward(x, params):
    """PyTorch-equivalent reference on the original (untransposed) params."""
    h_seq = jnp.transpose(x, (1, 0, 2)).astype(jnp.float32)
    for (w_ih, w_hh, b_ih, b_hh) in params["lstm"]:
        T, B, _ = h_seq.shape
        H = w_hh.shape[1]
        b = b_ih + b_hh

        def step(carry, xt):
            h, c = carry
            z = xt @ w_ih.T + h @ w_hh.T + b
            i = jax.nn.sigmoid(z[:, 0 * H:1 * H])
            f = jax.nn.sigmoid(z[:, 1 * H:2 * H])
            g = jnp.tanh(z[:, 2 * H:3 * H])
            o = jax.nn.sigmoid(z[:, 3 * H:4 * H])
            c = f * c + i * g
            h = o * jnp.tanh(c)
            return (h, c), h

        init = (jnp.zeros((B, H), jnp.float32), jnp.zeros((B, H), jnp.float32))
        _, h_seq = lax.scan(step, init, h_seq)
    w_fc, b_fc = params["fc"]
    return h_seq[-1] @ w_fc.T + b_fc


# ----------------------------------- main -----------------------------------

if __name__ == "__main__":
    INPUT_DIM, HIDDEN_DIM, NUM_LAYERS, OUTPUT_DIM = 4, 32, 2, 4
    BATCH, SEQ = 2, 8

    key = jax.random.PRNGKey(0)
    key, kx, kp = jax.random.split(key, 3)
    x = jax.random.normal(kx, (BATCH, SEQ, INPUT_DIM), jnp.float32)
    params = init_params(kp, INPUT_DIM, HIDDEN_DIM, NUM_LAYERS, OUTPUT_DIM)
    kparams = prepare_params(params)     # one-time layout conversion

    out = lstm_model_forward(x, kparams)
    out = jax.block_until_ready(out)
    assert out.shape == (BATCH, OUTPUT_DIM)

    ref = reference_forward(x, params)
    assert jnp.allclose(out, ref, atol=1e-5, rtol=1e-5), "mismatch vs reference"

    print("KERNEL_OK")
</pallas_src>

<mosaic_0001>
module attributes {stable_mosaic.version = 11 : i64} {
  func.func @kernel(%arg0: memref<64x4xf32, #tpu.memory_space<vmem>>, %arg1: memref<4x128xf32, #tpu.memory_space<vmem>>, %arg2: memref<32x128xf32, #tpu.memory_space<vmem>>, %arg3: memref<1x128xf32, #tpu.memory_space<vmem>>, %arg4: memref<32x128xf32, #tpu.memory_space<vmem>>, %arg5: memref<32x128xf32, #tpu.memory_space<vmem>>, %arg6: memref<1x128xf32, #tpu.memory_space<vmem>>, %arg7: memref<32x4xf32, #tpu.memory_space<vmem>>, %arg8: memref<1x4xf32, #tpu.memory_space<vmem>>, %arg9: memref<8x4xf32, #tpu.memory_space<vmem>>) attributes {dimension_semantics = [], scalar_prefetch = 0 : i64, scratch_operands = 0 : i64, tpu.core_type = #tpu.core_type<tc>} {
    %0 = tpu.iota {dimensions = array<i32: 1>} : vector<8x128xi32>
    %c96_i32 = arith.constant 96 : i32
    %1 = vector.broadcast %c96_i32 : i32 to vector<8x128xi32>
    %2 = arith.cmpi slt, %0, %1 : vector<8x128xi32>
    %cst = arith.constant 5.000000e-01 : f32
    %cst_0 = arith.constant 1.000000e+00 : f32
    %3 = vector.broadcast %cst : f32 to vector<8x128xf32>
    %4 = vector.broadcast %cst_0 : f32 to vector<8x128xf32>
    %5 = arith.select %2, %3, %4 : vector<8x128xi1>, vector<8x128xf32>
    %cst_1 = arith.constant 5.000000e-01 : f32
    %cst_2 = arith.constant 0.000000e+00 : f32
    %6 = vector.broadcast %cst_1 : f32 to vector<8x128xf32>
    %7 = vector.broadcast %cst_2 : f32 to vector<8x128xf32>
    %8 = arith.select %2, %6, %7 : vector<8x128xi1>, vector<8x128xf32>
    %c0 = arith.constant 0 : index
    %c0_3 = arith.constant 0 : index
    %9 = vector.load %arg1[%c0, %c0_3] : memref<4x128xf32, #tpu.memory_space<vmem>>, vector<4x128xf32>
    %c0_4 = arith.constant 0 : index
    %c0_5 = arith.constant 0 : index
    %10 = vector.load %arg2[%c0_4, %c0_5] : memref<32x128xf32, #tpu.memory_space<vmem>>, vector<32x128xf32>
    %c0_6 = arith.constant 0 : index
    %c0_7 = arith.constant 0 : index
    %11 = vector.load %arg3[%c0_6, %c0_7] : memref<1x128xf32, #tpu.memory_space<vmem>>, vector<1x128xf32>
    %c0_8 = arith.constant 0 : index
    %c0_9 = arith.constant 0 : index
    %12 = vector.load %arg0[%c0_8, %c0_9] : memref<64x4xf32, #tpu.memory_space<vmem>>, vector<64x4xf32>
    %cst_10 = arith.constant dense<0.000000e+00> : vector<64x128xf32>
    %13 = tpu.matmul %12, %9, %cst_10 {dimension_numbers = #tpu.dot_dimension_numbers<[1], [0], [0], [1], [0, 0, 1, 1], [], []>} : vector<64x4xf32>, vector<4x128xf32>, vector<64x128xf32> -> vector<64x128xf32>
    %14 = vector.broadcast %11 : vector<1x128xf32> to vector<64x128xf32>
    %15 = arith.addf %13, %14 : vector<64x128xf32>
    %cst_11 = arith.constant 0.000000e+00 : f32
    %16 = vector.broadcast %cst_11 : f32 to vector<8x32xf32>
    %cst_12 = arith.constant 0.000000e+00 : f32
    %17 = vector.broadcast %cst_12 : f32 to vector<8x32xf32>
    %18 = vector.extract_strided_slice %15 {offsets = [0, 0], sizes = [8, 128], strides = [1, 1]} : vector<64x128xf32> to vector<8x128xf32>
    %cst_13 = arith.constant dense<0.000000e+00> : vector<8x128xf32>
    %19 = tpu.matmul %16, %10, %cst_13 {dimension_numbers = #tpu.dot_dimension_numbers<[1], [0], [0], [1], [0, 0, 1, 1], [], []>} : vector<8x32xf32>, vector<32x128xf32>, vector<8x128xf32> -> vector<8x128xf32>
    %20 = arith.addf %18, %19 : vector<8x128xf32>
    %21 = arith.mulf %20, %5 : vector<8x128xf32>
    %22 = math.tanh %21 : vector<8x128xf32>
    %23 = arith.mulf %5, %22 : vector<8x128xf32>
    %24 = arith.addf %23, %8 : vector<8x128xf32>
    %25 = vector.extract_strided_slice %24 {offsets = [0, 0], sizes = [8, 32], strides = [1, 1]} : vector<8x128xf32> to vector<8x32xf32>
    %26 = vector.extract_strided_slice %24 {offsets = [0, 32], sizes = [8, 32], strides = [1, 1]} : vector<8x128xf32> to vector<8x32xf32>
    %27 = vector.extract_strided_slice %24 {offsets = [0, 64], sizes = [8, 32], strides = [1, 1]} : vector<8x128xf32> to vector<8x32xf32>
    %28 = vector.extract_strided_slice %24 {offsets = [0, 96], sizes = [8, 32], strides = [1, 1]} : vector<8x128xf32> to vector<8x32xf32>
    %29 = arith.mulf %26, %17 : vector<8x32xf32>
    %30 = arith.mulf %25, %28 : vector<8x32xf32>
    %31 = arith.addf %29, %30 : vector<8x32xf32>
    %32 = math.tanh %31 : vector<8x32xf32>
    %33 = arith.mulf %27, %32 : vector<8x32xf32>
    %34 = vector.extract_strided_slice %15 {offsets = [8, 0], sizes = [8, 128], strides = [1, 1]} : vector<64x128xf32> to vector<8x128xf32>
    %cst_14 = arith.constant dense<0.000000e+00> : vector<8x128xf32>
    %35 = tpu.matmul %33, %10, %cst_14 {dimension_numbers = #tpu.dot_dimension_numbers<[1], [0], [0], [1], [0, 0, 1, 1], [], []>} : vector<8x32xf32>, vector<32x128xf32>, vector<8x128xf32> -> vector<8x128xf32>
    %36 = arith.addf %34, %35 : vector<8x128xf32>
    %37 = arith.mulf %36, %5 : vector<8x128xf32>
    %38 = math.tanh %37 : vector<8x128xf32>
    %39 = arith.mulf %5, %38 : vector<8x128xf32>
    %40 = arith.addf %39, %8 : vector<8x128xf32>
    %41 = vector.extract_strided_slice %40 {offsets = [0, 0], sizes = [8, 32], strides = [1, 1]} : vector<8x128xf32> to vector<8x32xf32>
    %42 = vector.extract_strided_slice %40 {offsets = [0, 32], sizes = [8, 32], strides = [1, 1]} : vector<8x128xf32> to vector<8x32xf32>
    %43 = vector.extract_strided_slice %40 {offsets = [0, 64], sizes = [8, 32], strides = [1, 1]} : vector<8x128xf32> to vector<8x32xf32>
    %44 = vector.extract_strided_slice %40 {offsets = [0, 96], sizes = [8, 32], strides = [1, 1]} : vector<8x128xf32> to vector<8x32xf32>
    %45 = arith.mulf %42, %31 : vector<8x32xf32>
    %46 = arith.mulf %41, %44 : vector<8x32xf32>
    %47 = arith.addf %45, %46 : vector<8x32xf32>
    %48 = math.tanh %47 : vector<8x32xf32>
    %49 = arith.mulf %43, %48 : vector<8x32xf32>
    %50 = vector.extract_strided_slice %15 {offsets = [16, 0], sizes = [8, 128], strides = [1, 1]} : vector<64x128xf32> to vector<8x128xf32>
    %cst_15 = arith.constant dense<0.000000e+00> : vector<8x128xf32>
    %51 = tpu.matmul %49, %10, %cst_15 {dimension_numbers = #tpu.dot_dimension_numbers<[1], [0], [0], [1], [0, 0, 1, 1], [], []>} : vector<8x32xf32>, vector<32x128xf32>, vector<8x128xf32> -> vector<8x128xf32>
    %52 = arith.addf %50, %51 : vector<8x128xf32>
    %53 = arith.mulf %52, %5 : vector<8x128xf32>
    %54 = math.tanh %53 : vector<8x128xf32>
    %55 = arith.mulf %5, %54 : vector<8x128xf32>
    %56 = arith.addf %55, %8 : vector<8x128xf32>
    %57 = vector.extract_strided_slice %56 {offsets = [0, 0], sizes = [8, 32], strides = [1, 1]} : vector<8x128xf32> to vector<8x32xf32>
    %58 = vector.extract_strided_slice %56 {offsets = [0, 32], sizes = [8, 32], strides = [1, 1]} : vector<8x128xf32> to vector<8x32xf32>
    %59 = vector.extract_strided_slice %56 {offsets = [0, 64], sizes = [8, 32], strides = [1, 1]} : vector<8x128xf32> to vector<8x32xf32>
    %60 = vector.extract_strided_slice %56 {offsets = [0, 96], sizes = [8, 32], strides = [1, 1]} : vector<8x128xf32> to vector<8x32xf32>
    %61 = arith.mulf %58, %47 : vector<8x32xf32>
    %62 = arith.mulf %57, %60 : vector<8x32xf32>
    %63 = arith.addf %61, %62 : vector<8x32xf32>
    %64 = math.tanh %63 : vector<8x32xf32>
    %65 = arith.mulf %59, %64 : vector<8x32xf32>
    %66 = vector.extract_strided_slice %15 {offsets = [24, 0], sizes = [8, 128], strides = [1, 1]} : vector<64x128xf32> to vector<8x128xf32>
    %cst_16 = arith.constant dense<0.000000e+00> : vector<8x128xf32>
    %67 = tpu.matmul %65, %10, %cst_16 {dimension_numbers = #tpu.dot_dimension_numbers<[1], [0], [0], [1], [0, 0, 1, 1], [], []>} : vector<8x32xf32>, vector<32x128xf32>, vector<8x128xf32> -> vector<8x128xf32>
    %68 = arith.addf %66, %67 : vector<8x128xf32>
    %69 = arith.mulf %68, %5 : vector<8x128xf32>
    %70 = math.tanh %69 : vector<8x128xf32>
    %71 = arith.mulf %5, %70 : vector<8x128xf32>
    %72 = arith.addf %71, %8 : vector<8x128xf32>
    %73 = vector.extract_strided_slice %72 {offsets = [0, 0], sizes = [8, 32], strides = [1, 1]} : vector<8x128xf32> to vector<8x32xf32>
    %74 = vector.extract_strided_slice %72 {offsets = [0, 32], sizes = [8, 32], strides = [1, 1]} : vector<8x128xf32> to vector<8x32xf32>
    %75 = vector.extract_strided_slice %72 {offsets = [0, 64], sizes = [8, 32], strides = [1, 1]} : vector<8x128xf32> to vector<8x32xf32>
    %76 = vector.extract_strided_slice %72 {offsets = [0, 96], sizes = [8, 32], strides = [1, 1]} : vector<8x128xf32> to vector<8x32xf32>
    %77 = arith.mulf %74, %63 : vector<8x32xf32>
    %78 = arith.mulf %73, %76 : vector<8x32xf32>
    %79 = arith.addf %77, %78 : vector<8x32xf32>
    %80 = math.tanh %79 : vector<8x32xf32>
    %81 = arith.mulf %75, %80 : vector<8x32xf32>
    %82 = vector.extract_strided_slice %15 {offsets = [32, 0], sizes = [8, 128], strides = [1, 1]} : vector<64x128xf32> to vector<8x128xf32>
    %cst_17 = arith.constant dense<0.000000e+00> : vector<8x128xf32>
    %83 = tpu.matmul %81, %10, %cst_17 {dimension_numbers = #tpu.dot_dimension_numbers<[1], [0], [0], [1], [0, 0, 1, 1], [], []>} : vector<8x32xf32>, vector<32x128xf32>, vector<8x128xf32> -> vector<8x128xf32>
    %84 = arith.addf %82, %83 : vector<8x128xf32>
    %85 = arith.mulf %84, %5 : vector<8x128xf32>
    %86 = math.tanh %85 : vector<8x128xf32>
    %87 = arith.mulf %5, %86 : vector<8x128xf32>
    %88 = arith.addf %87, %8 : vector<8x128xf32>
    %89 = vector.extract_strided_slice %88 {offsets = [0, 0], sizes = [8, 32], strides = [1, 1]} : vector<8x128xf32> to vector<8x32xf32>
    %90 = vector.extract_strided_slice %88 {offsets = [0, 32], sizes = [8, 32], strides = [1, 1]} : vector<8x128xf32> to vector<8x32xf32>
    %91 = vector.extract_strided_slice %88 {offsets = [0, 64], sizes = [8, 32], strides = [1, 1]} : vector<8x128xf32> to vector<8x32xf32>
    %92 = vector.extract_strided_slice %88 {offsets = [0, 96], sizes = [8, 32], strides = [1, 1]} : vector<8x128xf32> to vector<8x32xf32>
    %93 = arith.mulf %90, %79 : vector<8x32xf32>
    %94 = arith.mulf %89, %92 : vector<8x32xf32>
    %95 = arith.addf %93, %94 : vector<8x32xf32>
    %96 = math.tanh %95 : vector<8x32xf32>
    %97 = arith.mulf %91, %96 : vector<8x32xf32>
    %98 = vector.extract_strided_slice %15 {offsets = [40, 0], sizes = [8, 128], strides = [1, 1]} : vector<64x128xf32> to vector<8x128xf32>
    %cst_18 = arith.constant dense<0.000000e+00> : vector<8x128xf32>
    %99 = tpu.matmul %97, %10, %cst_18 {dimension_numbers = #tpu.dot_dimension_numbers<[1], [0], [0], [1], [0, 0, 1, 1], [], []>} : vector<8x32xf32>, vector<32x128xf32>, vector<8x128xf32> -> vector<8x128xf32>
    %100 = arith.addf %98, %99 : vector<8x128xf32>
    %101 = arith.mulf %100, %5 : vector<8x128xf32>
    %102 = math.tanh %101 : vector<8x128xf32>
    %103 = arith.mulf %5, %102 : vector<8x128xf32>
    %104 = arith.addf %103, %8 : vector<8x128xf32>
    %105 = vector.extract_strided_slice %104 {offsets = [0, 0], sizes = [8, 32], strides = [1, 1]} : vector<8x128xf32> to vector<8x32xf32>
    %106 = vector.extract_strided_slice %104 {offsets = [0, 32], sizes = [8, 32], strides = [1, 1]} : vector<8x128xf32> to vector<8x32xf32>
    %107 = vector.extract_strided_slice %104 {offsets = [0, 64], sizes = [8, 32], strides = [1, 1]} : vector<8x128xf32> to vector<8x32xf32>
    %108 = vector.extract_strided_slice %104 {offsets = [0, 96], sizes = [8, 32], strides = [1, 1]} : vector<8x128xf32> to vector<8x32xf32>
    %109 = arith.mulf %106, %95 : vector<8x32xf32>
    %110 = arith.mulf %105, %108 : vector<8x32xf32>
    %111 = arith.addf %109, %110 : vector<8x32xf32>
    %112 = math.tanh %111 : vector<8x32xf32>
    %113 = arith.mulf %107, %112 : vector<8x32xf32>
    %114 = vector.extract_strided_slice %15 {offsets = [48, 0], sizes = [8, 128], strides = [1, 1]} : vector<64x128xf32> to vector<8x128xf32>
    %cst_19 = arith.constant dense<0.000000e+00> : vector<8x128xf32>
    %115 = tpu.matmul %113, %10, %cst_19 {dimension_numbers = #tpu.dot_dimension_numbers<[1], [0], [0], [1], [0, 0, 1, 1], [], []>} : vector<8x32xf32>, vector<32x128xf32>, vector<8x128xf32> -> vector<8x128xf32>
    %116 = arith.addf %114, %115 : vector<8x128xf32>
    %117 = arith.mulf %116, %5 : vector<8x128xf32>
    %118 = math.tanh %117 : vector<8x128xf32>
    %119 = arith.mulf %5, %118 : vector<8x128xf32>
    %120 = arith.addf %119, %8 : vector<8x128xf32>
    %121 = vector.extract_strided_slice %120 {offsets = [0, 0], sizes = [8, 32], strides = [1, 1]} : vector<8x128xf32> to vector<8x32xf32>
    %122 = vector.extract_strided_slice %120 {offsets = [0, 32], sizes = [8, 32], strides = [1, 1]} : vector<8x128xf32> to vector<8x32xf32>
    %123 = vector.extract_strided_slice %120 {offsets = [0, 64], sizes = [8, 32], strides = [1, 1]} : vector<8x128xf32> to vector<8x32xf32>
    %124 = vector.extract_strided_slice %120 {offsets = [0, 96], sizes = [8, 32], strides = [1, 1]} : vector<8x128xf32> to vector<8x32xf32>
    %125 = arith.mulf %122, %111 : vector<8x32xf32>
    %126 = arith.mulf %121, %124 : vector<8x32xf32>
    %127 = arith.addf %125, %126 : vector<8x32xf32>
    %128 = math.tanh %127 : vector<8x32xf32>
    %129 = arith.mulf %123, %128 : vector<8x32xf32>
    %130 = vector.extract_strided_slice %15 {offsets = [56, 0], sizes = [8, 128], strides = [1, 1]} : vector<64x128xf32> to vector<8x128xf32>
    %cst_20 = arith.constant dense<0.000000e+00> : vector<8x128xf32>
    %131 = tpu.matmul %129, %10, %cst_20 {dimension_numbers = #tpu.dot_dimension_numbers<[1], [0], [0], [1], [0, 0, 1, 1], [], []>} : vector<8x32xf32>, vector<32x128xf32>, vector<8x128xf32> -> vector<8x128xf32>
    %132 = arith.addf %130, %131 : vector<8x128xf32>
    %133 = arith.mulf %132, %5 : vector<8x128xf32>
    %134 = math.tanh %133 : vector<8x128xf32>
    %135 = arith.mulf %5, %134 : vector<8x128xf32>
    %136 = arith.addf %135, %8 : vector<8x128xf32>
    %137 = vector.extract_strided_slice %136 {offsets = [0, 0], sizes = [8, 32], strides = [1, 1]} : vector<8x128xf32> to vector<8x32xf32>
    %138 = vector.extract_strided_slice %136 {offsets = [0, 32], sizes = [8, 32], strides = [1, 1]} : vector<8x128xf32> to vector<8x32xf32>
    %139 = vector.extract_strided_slice %136 {offsets = [0, 64], sizes = [8, 32], strides = [1, 1]} : vector<8x128xf32> to vector<8x32xf32>
    %140 = vector.extract_strided_slice %136 {offsets = [0, 96], sizes = [8, 32], strides = [1, 1]} : vector<8x128xf32> to vector<8x32xf32>
    %141 = arith.mulf %138, %127 : vector<8x32xf32>
    %142 = arith.mulf %137, %140 : vector<8x32xf32>
    %143 = arith.addf %141, %142 : vector<8x32xf32>
    %144 = math.tanh %143 : vector<8x32xf32>
    %145 = arith.mulf %139, %144 : vector<8x32xf32>
    %c0_21 = arith.constant 0 : index
    %c0_22 = arith.constant 0 : index
    %146 = vector.load %arg4[%c0_21, %c0_22] : memref<32x128xf32, #tpu.memory_space<vmem>>, vector<32x128xf32>
    %c0_23 = arith.constant 0 : index
    %c0_24 = arith.constant 0 : index
    %147 = vector.load %arg5[%c0_23, %c0_24] : memref<32x128xf32, #tpu.memory_space<vmem>>, vector<32x128xf32>
    %c0_25 = arith.constant 0 : index
    %c0_26 = arith.constant 0 : index
    %148 = vector.load %arg6[%c0_25, %c0_26] : memref<1x128xf32, #tpu.memory_space<vmem>>, vector<1x128xf32>
    %149 = tpu.concatenate %33, %49, %65, %81, %97, %113, %129, %145 in 0 : vector<8x32xf32>, vector<8x32xf32>, vector<8x32xf32>, vector<8x32xf32>, vector<8x32xf32>, vector<8x32xf32>, vector<8x32xf32>, vector<8x32xf32> -> vector<64x32xf32>
    %cst_27 = arith.constant dense<0.000000e+00> : vector<64x128xf32>
    %150 = tpu.matmul %149, %146, %cst_27 {dimension_numbers = #tpu.dot_dimension_numbers<[1], [0], [0], [1], [0, 0, 1, 1], [], []>} : vector<64x32xf32>, vector<32x128xf32>, vector<64x128xf32> -> vector<64x128xf32>
    %151 = vector.broadcast %148 : vector<1x128xf32> to vector<64x128xf32>
    %152 = arith.addf %150, %151 : vector<64x128xf32>
    %cst_28 = arith.constant 0.000000e+00 : f32
    %153 = vector.broadcast %cst_28 : f32 to vector<8x32xf32>
    %cst_29 = arith.constant 0.000000e+00 : f32
    %154 = vector.broadcast %cst_29 : f32 to vector<8x32xf32>
    %155 = vector.extract_strided_slice %152 {offsets = [0, 0], sizes = [8, 128], strides = [1, 1]} : vector<64x128xf32> to vector<8x128xf32>
    %cst_30 = arith.constant dense<0.000000e+00> : vector<8x128xf32>
    %156 = tpu.matmul %153, %147, %cst_30 {dimension_numbers = #tpu.dot_dimension_numbers<[1], [0], [0], [1], [0, 0, 1, 1], [], []>} : vector<8x32xf32>, vector<32x128xf32>, vector<8x128xf32> -> vector<8x128xf32>
    %157 = arith.addf %155, %156 : vector<8x128xf32>
    %158 = arith.mulf %157, %5 : vector<8x128xf32>
    %159 = math.tanh %158 : vector<8x128xf32>
    %160 = arith.mulf %5, %159 : vector<8x128xf32>
    %161 = arith.addf %160, %8 : vector<8x128xf32>
    %162 = vector.extract_strided_slice %161 {offsets = [0, 0], sizes = [8, 32], strides = [1, 1]} : vector<8x128xf32> to vector<8x32xf32>
    %163 = vector.extract_strided_slice %161 {offsets = [0, 32], sizes = [8, 32], strides = [1, 1]} : vector<8x128xf32> to vector<8x32xf32>
    %164 = vector.extract_strided_slice %161 {offsets = [0, 64], sizes = [8, 32], strides = [1, 1]} : vector<8x128xf32> to vector<8x32xf32>
    %165 = vector.extract_strided_slice %161 {offsets = [0, 96], sizes = [8, 32], strides = [1, 1]} : vector<8x128xf32> to vector<8x32xf32>
    %166 = arith.mulf %163, %154 : vector<8x32xf32>
    %167 = arith.mulf %162, %165 : vector<8x32xf32>
    %168 = arith.addf %166, %167 : vector<8x32xf32>
    %169 = math.tanh %168 : vector<8x32xf32>
    %170 = arith.mulf %164, %169 : vector<8x32xf32>
    %171 = vector.extract_strided_slice %152 {offsets = [8, 0], sizes = [8, 128], strides = [1, 1]} : vector<64x128xf32> to vector<8x128xf32>
    %cst_31 = arith.constant dense<0.000000e+00> : vector<8x128xf32>
    %172 = tpu.matmul %170, %147, %cst_31 {dimension_numbers = #tpu.dot_dimension_numbers<[1], [0], [0], [1], [0, 0, 1, 1], [], []>} : vector<8x32xf32>, vector<32x128xf32>, vector<8x128xf32> -> vector<8x128xf32>
    %173 = arith.addf %171, %172 : vector<8x128xf32>
    %174 = arith.mulf %173, %5 : vector<8x128xf32>
    %175 = math.tanh %174 : vector<8x128xf32>
    %176 = arith.mulf %5, %175 : vector<8x128xf32>
    %177 = arith.addf %176, %8 : vector<8x128xf32>
    %178 = vector.extract_strided_slice %177 {offsets = [0, 0], sizes = [8, 32], strides = [1, 1]} : vector<8x128xf32> to vector<8x32xf32>
    %179 = vector.extract_strided_slice %177 {offsets = [0, 32], sizes = [8, 32], strides = [1, 1]} : vector<8x128xf32> to vector<8x32xf32>
    %180 = vector.extract_strided_slice %177 {offsets = [0, 64], sizes = [8, 32], strides = [1, 1]} : vector<8x128xf32> to vector<8x32xf32>
    %181 = vector.extract_strided_slice %177 {offsets = [0, 96], sizes = [8, 32], strides = [1, 1]} : vector<8x128xf32> to vector<8x32xf32>
    %182 = arith.mulf %179, %168 : vector<8x32xf32>
    %183 = arith.mulf %178, %181 : vector<8x32xf32>
    %184 = arith.addf %182, %183 : vector<8x32xf32>
    %185 = math.tanh %184 : vector<8x32xf32>
    %186 = arith.mulf %180, %185 : vector<8x32xf32>
    %187 = vector.extract_strided_slice %152 {offsets = [16, 0], sizes = [8, 128], strides = [1, 1]} : vector<64x128xf32> to vector<8x128xf32>
    %cst_32 = arith.constant dense<0.000000e+00> : vector<8x128xf32>
    %188 = tpu.matmul %186, %147, %cst_32 {dimension_numbers = #tpu.dot_dimension_numbers<[1], [0], [0], [1], [0, 0, 1, 1], [], []>} : vector<8x32xf32>, vector<32x128xf32>, vector<8x128xf32> -> vector<8x128xf32>
    %189 = arith.addf %187, %188 : vector<8x128xf32>
    %190 = arith.mulf %189, %5 : vector<8x128xf32>
    %191 = math.tanh %190 : vector<8x128xf32>
    %192 = arith.mulf %5, %191 : vector<8x128xf32>
    %193 = arith.addf %192, %8 : vector<8x128xf32>
    %194 = vector.extract_strided_slice %193 {offsets = [0, 0], sizes = [8, 32], strides = [1, 1]} : vector<8x128xf32> to vector<8x32xf32>
    %195 = vector.extract_strided_slice %193 {offsets = [0, 32], sizes = [8, 32], strides = [1, 1]} : vector<8x128xf32> to vector<8x32xf32>
    %196 = vector.extract_strided_slice %193 {offsets = [0, 64], sizes = [8, 32], strides = [1, 1]} : vector<8x128xf32> to vector<8x32xf32>
    %197 = vector.extract_strided_slice %193 {offsets = [0, 96], sizes = [8, 32], strides = [1, 1]} : vector<8x128xf32> to vector<8x32xf32>
    %198 = arith.mulf %195, %184 : vector<8x32xf32>
    %199 = arith.mulf %194, %197 : vector<8x32xf32>
    %200 = arith.addf %198, %199 : vector<8x32xf32>
    %201 = math.tanh %200 : vector<8x32xf32>
    %202 = arith.mulf %196, %201 : vector<8x32xf32>
    %203 = vector.extract_strided_slice %152 {offsets = [24, 0], sizes = [8, 128], strides = [1, 1]} : vector<64x128xf32> to vector<8x128xf32>
    %cst_33 = arith.constant dense<0.000000e+00> : vector<8x128xf32>
    %204 = tpu.matmul %202, %147, %cst_33 {dimension_numbers = #tpu.dot_dimension_numbers<[1], [0], [0], [1], [0, 0, 1, 1], [], []>} : vector<8x32xf32>, vector<32x128xf32>, vector<8x128xf32> -> vector<8x128xf32>
    %205 = arith.addf %203, %204 : vector<8x128xf32>
    %206 = arith.mulf %205, %5 : vector<8x128xf32>
    %207 = math.tanh %206 : vector<8x128xf32>
    %208 = arith.mulf %5, %207 : vector<8x128xf32>
    %209 = arith.addf %208, %8 : vector<8x128xf32>
    %210 = vector.extract_strided_slice %209 {offsets = [0, 0], sizes = [8, 32], strides = [1, 1]} : vector<8x128xf32> to vector<8x32xf32>
    %211 = vector.extract_strided_slice %209 {offsets = [0, 32], sizes = [8, 32], strides = [1, 1]} : vector<8x128xf32> to vector<8x32xf32>
    %212 = vector.extract_strided_slice %209 {offsets = [0, 64], sizes = [8, 32], strides = [1, 1]} : vector<8x128xf32> to vector<8x32xf32>
    %213 = vector.extract_strided_slice %209 {offsets = [0, 96], sizes = [8, 32], strides = [1, 1]} : vector<8x128xf32> to vector<8x32xf32>
    %214 = arith.mulf %211, %200 : vector<8x32xf32>
    %215 = arith.mulf %210, %213 : vector<8x32xf32>
    %216 = arith.addf %214, %215 : vector<8x32xf32>
    %217 = math.tanh %216 : vector<8x32xf32>
    %218 = arith.mulf %212, %217 : vector<8x32xf32>
    %219 = vector.extract_strided_slice %152 {offsets = [32, 0], sizes = [8, 128], strides = [1, 1]} : vector<64x128xf32> to vector<8x128xf32>
    %cst_34 = arith.constant dense<0.000000e+00> : vector<8x128xf32>
    %220 = tpu.matmul %218, %147, %cst_34 {dimension_numbers = #tpu.dot_dimension_numbers<[1], [0], [0], [1], [0, 0, 1, 1], [], []>} : vector<8x32xf32>, vector<32x128xf32>, vector<8x128xf32> -> vector<8x128xf32>
    %221 = arith.addf %219, %220 : vector<8x128xf32>
    %222 = arith.mulf %221, %5 : vector<8x128xf32>
    %223 = math.tanh %222 : vector<8x128xf32>
    %224 = arith.mulf %5, %223 : vector<8x128xf32>
    %225 = arith.addf %224, %8 : vector<8x128xf32>
    %226 = vector.extract_strided_slice %225 {offsets = [0, 0], sizes = [8, 32], strides = [1, 1]} : vector<8x128xf32> to vector<8x32xf32>
    %227 = vector.extract_strided_slice %225 {offsets = [0, 32], sizes = [8, 32], strides = [1, 1]} : vector<8x128xf32> to vector<8x32xf32>
    %228 = vector.extract_strided_slice %225 {offsets = [0, 64], sizes = [8, 32], strides = [1, 1]} : vector<8x128xf32> to vector<8x32xf32>
    %229 = vector.extract_strided_slice %225 {offsets = [0, 96], sizes = [8, 32], strides = [1, 1]} : vector<8x128xf32> to vector<8x32xf32>
    %230 = arith.mulf %227, %216 : vector<8x32xf32>
    %231 = arith.mulf %226, %229 : vector<8x32xf32>
    %232 = arith.addf %230, %231 : vector<8x32xf32>
    %233 = math.tanh %232 : vector<8x32xf32>
    %234 = arith.mulf %228, %233 : vector<8x32xf32>
    %235 = vector.extract_strided_slice %152 {offsets = [40, 0], sizes = [8, 128], strides = [1, 1]} : vector<64x128xf32> to vector<8x128xf32>
    %cst_35 = arith.constant dense<0.000000e+00> : vector<8x128xf32>
    %236 = tpu.matmul %234, %147, %cst_35 {dimension_numbers = #tpu.dot_dimension_numbers<[1], [0], [0], [1], [0, 0, 1, 1], [], []>} : vector<8x32xf32>, vector<32x128xf32>, vector<8x128xf32> -> vector<8x128xf32>
    %237 = arith.addf %235, %236 : vector<8x128xf32>
    %238 = arith.mulf %237, %5 : vector<8x128xf32>
    %239 = math.tanh %238 : vector<8x128xf32>
    %240 = arith.mulf %5, %239 : vector<8x128xf32>
    %241 = arith.addf %240, %8 : vector<8x128xf32>
    %242 = vector.extract_strided_slice %241 {offsets = [0, 0], sizes = [8, 32], strides = [1, 1]} : vector<8x128xf32> to vector<8x32xf32>
    %243 = vector.extract_strided_slice %241 {offsets = [0, 32], sizes = [8, 32], strides = [1, 1]} : vector<8x128xf32> to vector<8x32xf32>
    %244 = vector.extract_strided_slice %241 {offsets = [0, 64], sizes = [8, 32], strides = [1, 1]} : vector<8x128xf32> to vector<8x32xf32>
    %245 = vector.extract_strided_slice %241 {offsets = [0, 96], sizes = [8, 32], strides = [1, 1]} : vector<8x128xf32> to vector<8x32xf32>
    %246 = arith.mulf %243, %232 : vector<8x32xf32>
    %247 = arith.mulf %242, %245 : vector<8x32xf32>
    %248 = arith.addf %246, %247 : vector<8x32xf32>
    %249 = math.tanh %248 : vector<8x32xf32>
    %250 = arith.mulf %244, %249 : vector<8x32xf32>
    %251 = vector.extract_strided_slice %152 {offsets = [48, 0], sizes = [8, 128], strides = [1, 1]} : vector<64x128xf32> to vector<8x128xf32>
    %cst_36 = arith.constant dense<0.000000e+00> : vector<8x128xf32>
    %252 = tpu.matmul %250, %147, %cst_36 {dimension_numbers = #tpu.dot_dimension_numbers<[1], [0], [0], [1], [0, 0, 1, 1], [], []>} : vector<8x32xf32>, vector<32x128xf32>, vector<8x128xf32> -> vector<8x128xf32>
    %253 = arith.addf %251, %252 : vector<8x128xf32>
    %254 = arith.mulf %253, %5 : vector<8x128xf32>
    %255 = math.tanh %254 : vector<8x128xf32>
    %256 = arith.mulf %5, %255 : vector<8x128xf32>
    %257 = arith.addf %256, %8 : vector<8x128xf32>
    %258 = vector.extract_strided_slice %257 {offsets = [0, 0], sizes = [8, 32], strides = [1, 1]} : vector<8x128xf32> to vector<8x32xf32>
    %259 = vector.extract_strided_slice %257 {offsets = [0, 32], sizes = [8, 32], strides = [1, 1]} : vector<8x128xf32> to vector<8x32xf32>
    %260 = vector.extract_strided_slice %257 {offsets = [0, 64], sizes = [8, 32], strides = [1, 1]} : vector<8x128xf32> to vector<8x32xf32>
    %261 = vector.extract_strided_slice %257 {offsets = [0, 96], sizes = [8, 32], strides = [1, 1]} : vector<8x128xf32> to vector<8x32xf32>
    %262 = arith.mulf %259, %248 : vector<8x32xf32>
    %263 = arith.mulf %258, %261 : vector<8x32xf32>
    %264 = arith.addf %262, %263 : vector<8x32xf32>
    %265 = math.tanh %264 : vector<8x32xf32>
    %266 = arith.mulf %260, %265 : vector<8x32xf32>
    %267 = vector.extract_strided_slice %152 {offsets = [56, 0], sizes = [8, 128], strides = [1, 1]} : vector<64x128xf32> to vector<8x128xf32>
    %cst_37 = arith.constant dense<0.000000e+00> : vector<8x128xf32>
    %268 = tpu.matmul %266, %147, %cst_37 {dimension_numbers = #tpu.dot_dimension_numbers<[1], [0], [0], [1], [0, 0, 1, 1], [], []>} : vector<8x32xf32>, vector<32x128xf32>, vector<8x128xf32> -> vector<8x128xf32>
    %269 = arith.addf %267, %268 : vector<8x128xf32>
    %270 = arith.mulf %269, %5 : vector<8x128xf32>
    %271 = math.tanh %270 : vector<8x128xf32>
    %272 = arith.mulf %5, %271 : vector<8x128xf32>
    %273 = arith.addf %272, %8 : vector<8x128xf32>
    %274 = vector.extract_strided_slice %273 {offsets = [0, 0], sizes = [8, 32], strides = [1, 1]} : vector<8x128xf32> to vector<8x32xf32>
    %275 = vector.extract_strided_slice %273 {offsets = [0, 32], sizes = [8, 32], strides = [1, 1]} : vector<8x128xf32> to vector<8x32xf32>
    %276 = vector.extract_strided_slice %273 {offsets = [0, 64], sizes = [8, 32], strides = [1, 1]} : vector<8x128xf32> to vector<8x32xf32>
    %277 = vector.extract_strided_slice %273 {offsets = [0, 96], sizes = [8, 32], strides = [1, 1]} : vector<8x128xf32> to vector<8x32xf32>
    %278 = arith.mulf %275, %264 : vector<8x32xf32>
    %279 = arith.mulf %274, %277 : vector<8x32xf32>
    %280 = arith.addf %278, %279 : vector<8x32xf32>
    %281 = math.tanh %280 : vector<8x32xf32>
    %282 = arith.mulf %276, %281 : vector<8x32xf32>
    %c0_38 = arith.constant 0 : index
    %c0_39 = arith.constant 0 : index
    %283 = vector.load %arg7[%c0_38, %c0_39] : memref<32x4xf32, #tpu.memory_space<vmem>>, vector<32x4xf32>
    %cst_40 = arith.constant dense<0.000000e+00> : vector<8x4xf32>
    %284 = tpu.matmul %282, %283, %cst_40 {dimension_numbers = #tpu.dot_dimension_numbers<[1], [0], [0], [1], [0, 0, 1, 1], [], []>} : vector<8x32xf32>, vector<32x4xf32>, vector<8x4xf32> -> vector<8x4xf32>
    %c0_41 = arith.constant 0 : index
    %c0_42 = arith.constant 0 : index
    %285 = vector.load %arg8[%c0_41, %c0_42] : memref<1x4xf32, #tpu.memory_space<vmem>>, vector<1x4xf32>
    %286 = vector.broadcast %285 : vector<1x4xf32> to vector<8x4xf32>
    %287 = arith.addf %284, %286 : vector<8x4xf32>
    %c0_43 = arith.constant 0 : index
    %c0_44 = arith.constant 0 : index
    %288 = vector.load %arg9[%c0_43, %c0_44] : memref<8x4xf32, #tpu.memory_space<vmem>>, vector<8x4xf32>
    tpu.vector_store %arg9[%c0_43, %c0_44], %287 {strides = array<i32>} : memref<8x4xf32, #tpu.memory_space<vmem>>, vector<8x4xf32>,
    return
  }
}

</mosaic_0001>

<bundles_post_ra>
// kernel: _forward.1
= control target key start
LH: loop header
LB: loop body
LE: loop exit
PB: predicated region body
PF: predicated region fallthrough
CT: control target
= control target key end

     0   :  { %vm82_vm0 = vcmask 1043456   ;;  %vm57_vm1 = vcmask 31744   ;;  %v2495_v0 = vmov 0.0|0.0   ;;  %vm2496_vm2 = vmmov 0   ;;  %s2500_s23 = smov 64   ;;  %s2972_s2 = inlined_call_operand.vmem [shape: f32[32,128], index: 2, kind: input, shape index: {}]   ;;  %s2973_s1 = inlined_call_operand.vmem [shape: f32[4,128], index: 1, kind: input, shape index: {}]   ;;  %s2974_s0 = inlined_call_operand.vmem [shape: f32[64,4], index: 0, kind: input, shape index: {}]   ;;  %s2975_s3 = inlined_call_operand.vmem [shape: f32[1,128], index: 3, kind: input, shape index: {}]   ;;  %s2976_s4 = inlined_call_operand.vmem [shape: f32[32,128], index: 4, kind: input, shape index: {}]   ;;  %s2977_s5 = inlined_call_operand.vmem [shape: f32[32,128], index: 5, kind: input, shape index: {}]   ;;  %s2978_s6 = inlined_call_operand.vmem [shape: f32[1,128], index: 6, kind: input, shape index: {}]   ;;  %s2979_s7 = inlined_call_operand.vmem [shape: f32[32,4], index: 7, kind: input, shape index: {}]   ;;  %s2980_s8 = inlined_call_operand.vmem [shape: f32[1,4], index: 8, kind: input, shape index: {}]   ;;  %s2981_s9 = inlined_call_operand.vmem [shape: f32[8,4], index: 9, kind: output, shape index: {}]  }
   0x1   :  { %2315 = vmatprep.subr.bf16.mxu1 %v2495_v0  ;;  %v38_v1 = vld [vmem:[%s2972_s2] sm:$0xff]  ;;  %v39_v2 = vld [vmem:[%s2972_s2 + $0x8] sm:$0xff]  ;;  %v40_v7 = vld [vmem:[%s2972_s2 + $0x10] sm:$0xff]  ;;  %v2497_v8 = vmov 0.0   ;;  %v32_v11 = vlaneseq  ;;  %v2498_v17 = vmov 1.0   ;;  %vm191_vm4 = vcmask 261120  }
   0x2   :  { %v37_v3 = vld [vmem:[%s2973_s1] sm:$0xf]  ;;  %v2561_v4 = vpack.c.bf16 %v39_v2, %v38_v1  ;;  %v44_v6 = vld [vmem:[%s2974_s0 + $0x8] sm:$0xff]  ;;  %2116 = vmatprep.mubr.msk.f32.mxu1 %vm2496_vm2, %v2497_v8  ;;  %v41_v9 = vld [vmem:[%s2972_s2 + $0x18] sm:$0xff] }
   0x3   :  { %2094 = vmatprep.subr.msk.mxu0 %vm82_vm0, %v37_v3  ;;  %v43_v5 = vld [vmem:[%s2974_s0] sm:$0xff]  ;;  %v2582_v10 = vpack.c.bf16 %v41_v9, %v40_v7  ;;  %v33_v13 = vand.u32 127, %v32_v11  ;;  %v45_v49 = vld [vmem:[%s2974_s0 + $0x10] sm:$0xff]  ;;  %v46_v50 = vld [vmem:[%s2974_s0 + $0x18] sm:$0xff] }
   0x4   :  { %2095 = vmatpush3.msk.msra.mxu0 %vm82_vm0, %v37_v3  ;;  %2096 = vmatprep.mubr.msk.f32.mxu0 %vm57_vm1, %v43_v5  ;;  %v2602_v14 = vld [vmem:[%s2975_s3] ss:$0 sm:$0xff]  ;;  %s2499_s3 = smov 32   ;;  %v48_v52 = vld [vmem:[%s2974_s0 + $0x28] sm:$0xff]  ;;  %v49_v53 = vld [vmem:[%s2974_s0 + $0x30] sm:$0xff] }
   0x5   :  { %2317 = vmatpush3.bf16.msra.mxu1 %v2561_v4  ;;  %2097 = vmatmul.mubr.msk.f32.vlgmr.msra.gmra.mrb[0].mxu0 %vm57_vm1, %v44_v6  ;;  %vm34_vm3 = vcmp.lt.s32.totalorder %v33_v13, 96  ;;  %v47_v51 = vld [vmem:[%s2974_s0 + $0x20] sm:$0xff]  ;;  %v50_v54 = vld [vmem:[%s2974_s0 + $0x38] sm:$0xff] }
   0x6   :  { %2318 = vmatprep.subr.bf16.mxu1 %v2495_v0  ;;  %2327 = vmatprep.subr.bf16.mxu0 %v2495_v0  ;;  %v2605_v18 = vsel %vm34_vm3, 0.5, %v2498_v17  ;;  %v2609_v24 = vsel %vm34_vm3, 0.5, %v2497_v8 }
   0x7   :  { %2329 = vmatpush3.bf16.msra.mxu0 %v2561_v4  ;;  %2099 = vmatprep.mubr.msk.f32.mxu0 %vm57_vm1, %v45_v49 }
   0x8   :  { %2330 = vmatprep.subr.bf16.mxu0 %v2495_v0 }
   0x9   :  { %2320 = vmatpush3.bf16.msra.mxu1 %v2582_v10  ;;  %2100 = vmatmul.mubr.msk.f32.gmra.mrb[2].mxu0 %vm57_vm1, %v46_v50 }
   0xa   :  { %2321 = vmatprep.subr.bf16.mxu1 %v2495_v0  ;;  %2102 = vmatprep.mubr.msk.f32.mxu0 %vm57_vm1, %v47_v51 }
   0xb   :  { %2332 = vmatpush3.bf16.msra.mxu0 %v2582_v10 }
   0xc   :  { %2117 = vmatmul.mubr.f32.vlgmr.msra.gmra.mrb[0].mxu1 %v2497_v8  ;;  %2339 = vmatprep.subr.bf16.mxu0 %v2495_v0 }
   0xd   :  { %2323 = vmatpush3.bf16.msra.mxu1 %v2561_v4  ;;  %2127 = vmatprep.mubr.msk.f32.mxu1 %vm2496_vm2, %v2497_v8 }
   0xe   :  { %2324 = vmatprep.subr.bf16.mxu1 %v2495_v0  ;;  %2103 = vmatmul.mubr.msk.f32.gmra.mrb[4].mxu0 %vm57_vm1, %v48_v52 }
   0xf   :  { %2105 = vmatprep.mubr.msk.f32.mxu0 %vm57_vm1, %v49_v53 }
  0x11   :  { %2326 = vmatpush3.bf16.msra.mxu1 %v2582_v10 }
  0x12   :  { %2333 = vmatprep.subr.bf16.mxu1 %v2495_v0  ;;  %2106 = vmatmul.mubr.msk.f32.gmra.mrb[6].mxu0 %vm57_vm1, %v50_v54 }
  0x13   :  { %2138 = vmatprep.mubr.msk.f32.mxu0 %vm2496_vm2, %v2497_v8 }
  0xd8   :  { %v2098_v12 = vpop.f32.mrb[0].mxu0 }
  0xd9   :  { %v152_v15 = vpop.f32.mrb[1].mxu0  ;;  %v158_v36 = vadd.f32 %v2098_v12, %v2602_v14 }
  0xda   :  { %v153_v16 = vadd.f32 %v2602_v14, %v152_v15 }
  0xdc   :  { %v2101_v58 = vpop.f32.mrb[2].mxu0 }
  0xdd   :  { %v162_v59 = vpop.f32.mrb[3].mxu0 }
  0xde   :  { %v163_v2 = vadd.f32 %v2602_v14, %v162_v59 }
  0xdf   :  { %v261_v19 = vpop.f32.mrb[0].mxu1 }
  0xe0   :  { %v265_v20 = vadd.f32 %v261_v19, %v153_v16  ;;  %v2118_v21 = vpop.f32.mrb[1].mxu1 }
  0xe1   :  { %v2661_v60 = vpop.f32.mrb[4].mxu0 }
  0xe2   :  { %v266_v22 = vmul.f32 %v265_v20, %v2605_v18  ;;  %v2663_v61 = vpop.f32.mrb[5].mxu0 }
  0xe4   :  { %2431 = vtanh.f32 %v266_v22 }
  0xe5   :  { %v2665_v62 = vpop.f32.mrb[6].mxu0 }
  0xe6   :  { %v2667_v63 = vpop.f32.mrb[7].mxu0 }
  0xee   :  { %v2432_v23 = vpop.eup %2431 }
  0xef   :  { %v268_v25 = vmul.f32 %v2432_v23, %v2605_v18 }
  0xf1   :  { %v269_v26 = vadd.f32 %v268_v25, %v2609_v24  ;;  %v168_v25 = vadd.f32 %v2101_v58, %v2602_v14 }
  0xf3   :  { %272 = vrot.lane.b32.xlu0 %v269_v26, %s2499_s3  ;;  %v270_v29 = vmul.f32 0.0, %v269_v26 }
 0x165   :  { %v273_v27 = vpop.permute.xlu0 %272 }
 0x166   :  { %v275_v28 = vmul.f32 %v273_v27, %v269_v26 }
 0x168   :  { %277 = vrot.lane.b32.xlu0 %v275_v28, %s2499_s3 }
 0x1da   :  { %v278_v30 = vpop.permute.xlu0 %277 }
 0x1db   :  { %v280_v31 = vadd.f32 %v278_v30, %v270_v29 }
 0x1dd   :  { %2433 = vtanh.f32 %v280_v31 }
 0x1e7   :  { %v2434_v32 = vpop.eup %2433 }
 0x1e8   :  { %283 = vrot.lane.b32.xlu1 %v2434_v32, %s2499_s3 }
 0x25a   :  { %v284_v33 = vpop.permute.xlu1 %283 }
 0x25b   :  { %v286_v34 = vmul.f32 %v284_v33, %v269_v26 }
 0x25d   :  { %288 = vrot.lane.b32.xlu1 %v286_v34, %s2500_s23 }
 0x2cf   :  { %v2617_v35 = vpop.permute.xlu1 %288 }
 0x2d0   :  { %2128 = vmatmul.mubr.msk.f32.vlgmr.msra.gmra.mrb[2].mxu1 %vm191_vm4, %v2617_v35 }
 0x2d1   :  { %2335 = vmatpush3.bf16.msra.mxu1 %v2561_v4  ;;  %2149 = vmatprep.mubr.msk.f32.mxu1 %vm2496_vm2, %v2497_v8 }
 0x2d2   :  { %2336 = vmatprep.subr.bf16.mxu1 %v2495_v0 }
 0x2d5   :  { %2338 = vmatpush3.bf16.msra.mxu1 %v2582_v10 }
 0x2d6   :  { %2345 = vmatprep.subr.bf16.mxu1 %v2495_v0 }
 0x3a3   :  { %v358_v37 = vpop.f32.mrb[2].mxu1 }
 0x3a4   :  { %v362_v38 = vadd.f32 %v358_v37, %v158_v36  ;;  %v2129_v39 = vpop.f32.mrb[3].mxu1 }
 0x3a6   :  { %v363_v40 = vmul.f32 %v362_v38, %v2605_v18 }
 0x3a8   :  { %2435 = vtanh.f32 %v363_v40 }
 0x3b2   :  { %v2436_v41 = vpop.eup %2435 }
 0x3b3   :  { %v365_v42 = vmul.f32 %v2436_v41, %v2605_v18 }
 0x3b5   :  { %v366_v43 = vadd.f32 %v365_v42, %v2609_v24 }
 0x3b7   :  { %369 = vrot.lane.b32.xlu0 %v366_v43, %s2499_s3  ;;  %v367_v46 = vmul.f32 %v366_v43, %v280_v31 }
 0x429   :  { %v370_v44 = vpop.permute.xlu0 %369 }
 0x42a   :  { %v372_v45 = vmul.f32 %v370_v44, %v366_v43 }
 0x42c   :  { %374 = vrot.lane.b32.xlu1 %v372_v45, %s2499_s3 }
 0x49e   :  { %v375_v47 = vpop.permute.xlu1 %374 }
 0x49f   :  { %v377_v48 = vadd.f32 %v375_v47, %v367_v46 }
 0x4a1   :  { %2437 = vtanh.f32 %v377_v48 }
 0x4ab   :  { %v2438_v55 = vpop.eup %2437 }
 0x4ac   :  { %380 = vrot.lane.b32.xlu0 %v2438_v55, %s2499_s3 }
 0x51e   :  { %v381_v56 = vpop.permute.xlu0 %380 }
 0x51f   :  { %v383_v57 = vmul.f32 %v381_v56, %v366_v43  ;;  %v173_v43 = vadd.f32 %v2602_v14, %v2663_v61  ;;  %v178_v61 = vadd.f32 %v2661_v60, %v2602_v14 }
 0x521   :  { %385 = vrot.lane.b32.xlu1 %v383_v57, %s2500_s23 }
 0x593   :  { %v2669_v1 = vpop.permute.xlu1 %385 }
 0x594   :  { %2139 = vmatmul.mubr.msk.f32.vlgmr.msra.gmra.mrb[8].mxu0 %vm191_vm4, %v2669_v1 }
 0x595   :  { %2341 = vmatpush3.bf16.msra.mxu0 %v2561_v4  ;;  %2160 = vmatprep.mubr.msk.f32.mxu0 %vm2496_vm2, %v2497_v8 }
 0x596   :  { %2342 = vmatprep.subr.bf16.mxu0 %v2495_v0 }
 0x599   :  { %2344 = vmatpush3.bf16.msra.mxu0 %v2582_v10 }
 0x59a   :  { %2351 = vmatprep.subr.bf16.mxu0 %v2495_v0 }
 0x667   :  { %v455_v3 = vpop.f32.mrb[8].mxu0 }
 0x668   :  { %v459_v5 = vadd.f32 %v455_v3, %v163_v2  ;;  %v2140_v6 = vpop.f32.mrb[9].mxu0 }
 0x66a   :  { %v460_v7 = vmul.f32 %v459_v5, %v2605_v18 }
 0x66c   :  { %2439 = vtanh.f32 %v460_v7 }
 0x676   :  { %v2440_v9 = vpop.eup %2439 }
 0x677   :  { %v462_v11 = vmul.f32 %v2440_v9, %v2605_v18 }
 0x679   :  { %v463_v12 = vadd.f32 %v462_v11, %v2609_v24 }
 0x67b   :  { %466 = vrot.lane.b32.xlu0 %v463_v12, %s2499_s3  ;;  %v464_v16 = vmul.f32 %v463_v12, %v377_v48 }
 0x6ed   :  { %v467_v13 = vpop.permute.xlu0 %466 }
 0x6ee   :  { %v469_v15 = vmul.f32 %v467_v13, %v463_v12 }
 0x6f0   :  { %471 = vrot.lane.b32.xlu1 %v469_v15, %s2499_s3  ;;  %v966_v15 = vld [vmem:[%s2976_s4] sm:$0xff] }
 0x762   :  { %v472_v17 = vpop.permute.xlu1 %471 }
 0x763   :  { %v474_v19 = vadd.f32 %v472_v17, %v464_v16  ;;  %v967_v16 = vld [vmem:[%s2976_s4 + $0x8] sm:$0xff] }
 0x764   :  { %v2363_v17 = vpack.c.bf16 %v967_v16, %v966_v15 }
 0x765   :  { %2441 = vtanh.f32 %v474_v19 }
 0x76f   :  { %v2442_v20 = vpop.eup %2441 }
 0x770   :  { %477 = vrot.lane.b32.xlu0 %v2442_v20, %s2499_s3 }
 0x7e2   :  { %v478_v21 = vpop.permute.xlu0 %477 }
 0x7e3   :  { %v480_v22 = vmul.f32 %v478_v21, %v463_v12 }
 0x7e5   :  { %482 = vrot.lane.b32.xlu1 %v480_v22, %s2500_s23  ;;  %v968_v22 = vld [vmem:[%s2976_s4 + $0x10] sm:$0xff] }
 0x857   :  { %v2687_v23 = vpop.permute.xlu1 %482 }
 0x858   :  { %2150 = vmatmul.mubr.msk.f32.vlgmr.msra.gmra.mrb[4].mxu1 %vm191_vm4, %v2687_v23 }
 0x859   :  { %2347 = vmatpush3.bf16.msra.mxu1 %v2561_v4  ;;  %2171 = vmatprep.mubr.msk.f32.mxu1 %vm2496_vm2, %v2497_v8 }
 0x85a   :  { %2348 = vmatprep.subr.bf16.mxu1 %v2495_v0 }
 0x85d   :  { %2350 = vmatpush3.bf16.msra.mxu1 %v2582_v10 }
 0x85e   :  { %2357 = vmatprep.subr.bf16.mxu1 %v2495_v0 }
 0x92b   :  { %v552_v26 = vpop.f32.mrb[4].mxu1 }
 0x92c   :  { %v556_v27 = vadd.f32 %v552_v26, %v168_v25  ;;  %v2151_v28 = vpop.f32.mrb[5].mxu1  ;;  %v969_v25 = vld [vmem:[%s2976_s4 + $0x18] sm:$0xff] }
 0x92d   :  { %v2367_v26 = vpack.c.bf16 %v969_v25, %v968_v22 }
 0x92e   :  { %v557_v29 = vmul.f32 %v556_v27, %v2605_v18 }
 0x930   :  { %2443 = vtanh.f32 %v557_v29 }
 0x93a   :  { %v2444_v30 = vpop.eup %2443 }
 0x93b   :  { %v559_v31 = vmul.f32 %v2444_v30, %v2605_v18 }
 0x93d   :  { %v560_v32 = vadd.f32 %v559_v31, %v2609_v24 }
 0x93f   :  { %563 = vrot.lane.b32.xlu0 %v560_v32, %s2499_s3  ;;  %v561_v36 = vmul.f32 %v560_v32, %v474_v19 }
 0x9b1   :  { %v564_v33 = vpop.permute.xlu0 %563 }
 0x9b2   :  { %v566_v34 = vmul.f32 %v564_v33, %v560_v32 }
 0x9b4   :  { %568 = vrot.lane.b32.xlu1 %v566_v34, %s2499_s3 }
 0xa26   :  { %v569_v37 = vpop.permute.xlu1 %568 }
 0xa27   :  { %v571_v38 = vadd.f32 %v569_v37, %v561_v36 }
 0xa29   :  { %2445 = vtanh.f32 %v571_v38 }
 0xa33   :  { %v2446_v39 = vpop.eup %2445 }
 0xa34   :  { %574 = vrot.lane.b32.xlu0 %v2446_v39, %s2499_s3 }
 0xaa6   :  { %v575_v40 = vpop.permute.xlu0 %574 }
 0xaa7   :  { %v577_v41 = vmul.f32 %v575_v40, %v560_v32 }
 0xaa9   :  { %579 = vrot.lane.b32.xlu1 %v577_v41, %s2500_s23 }
 0xb1b   :  { %v2705_v42 = vpop.permute.xlu1 %579 }
 0xb1c   :  { %2161 = vmatmul.mubr.msk.f32.vlgmr.msra.gmra.mrb[10].mxu0 %vm191_vm4, %v2705_v42 }
 0xb1d   :  { %2353 = vmatpush3.bf16.msra.mxu0 %v2561_v4  ;;  %2182 = vmatprep.mubr.msk.f32.mxu0 %vm2496_vm2, %v2497_v8 }
 0xb1e   :  { %2354 = vmatprep.subr.bf16.mxu0 %v2495_v0 }
 0xb21   :  { %2356 = vmatpush3.bf16.msra.mxu0 %v2582_v10 }
 0xb22   :  { %2364 = vmatprep.subr.bf16.mxu0 %v2363_v17 }
 0xbef   :  { %v649_v44 = vpop.f32.mrb[10].mxu0 }
 0xbf0   :  { %v653_v45 = vadd.f32 %v649_v44, %v173_v43  ;;  %v2162_v46 = vpop.f32.mrb[11].mxu0 }
 0xbf1   :  { %v971_v46 = vld [vmem:[%s2977_s5 + $0x8] sm:$0xff] }
 0xbf2   :  { %v654_v47 = vmul.f32 %v653_v45, %v2605_v18  ;;  %v970_v45 = vld [vmem:[%s2977_s5] sm:$0xff] }
 0xbf4   :  { %2447 = vtanh.f32 %v654_v47  ;;  %v2790_v47 = vpack.c.bf16 %v971_v46, %v970_v45 }
 0xbfe   :  { %v2448_v48 = vpop.eup %2447 }
 0xbff   :  { %v656_v49 = vmul.f32 %v2448_v48, %v2605_v18  ;;  %v972_v48 = vld [vmem:[%s2977_s5 + $0x10] sm:$0xff] }
 0xc01   :  { %v657_v50 = vadd.f32 %v656_v49, %v2609_v24  ;;  %v973_v49 = vld [vmem:[%s2977_s5 + $0x18] sm:$0xff] }
 0xc03   :  { %660 = vrot.lane.b32.xlu0 %v657_v50, %s2499_s3  ;;  %v658_v53 = vmul.f32 %v657_v50, %v571_v38 }
 0xc75   :  { %v661_v51 = vpop.permute.xlu0 %660 }
 0xc76   :  { %v663_v52 = vmul.f32 %v661_v51, %v657_v50 }
 0xc78   :  { %665 = vrot.lane.b32.xlu1 %v663_v52, %s2499_s3 }
 0xcea   :  { %v666_v54 = vpop.permute.xlu1 %665 }
 0xceb   :  { %v668_v55 = vadd.f32 %v666_v54, %v658_v53  ;;  %v188_v54 = vadd.f32 %v2665_v62, %v2602_v14 }
 0xced   :  { %2449 = vtanh.f32 %v668_v55 }
 0xcf7   :  { %v2450_v56 = vpop.eup %2449 }
 0xcf8   :  { %671 = vrot.lane.b32.xlu0 %v2450_v56, %s2499_s3 }
 0xd6a   :  { %v672_v57 = vpop.permute.xlu0 %671 }
 0xd6b   :  { %v674_v58 = vmul.f32 %v672_v57, %v657_v50  ;;  %v2800_v50 = vpack.c.bf16 %v973_v49, %v972_v48 }
 0xd6d   :  { %676 = vrot.lane.b32.xlu1 %v674_v58, %s2500_s23  ;;  %v2825_v58 = vld [vmem:[%s2978_s6] ss:$0 sm:$0xff] }
 0xddf   :  { %v677_v59 = vpop.permute.xlu1 %676 }
 0xde0   :  { %2172 = vmatmul.mubr.msk.f32.vlgmr.msra.gmra.mrb[6].mxu1 %vm191_vm4, %v677_v59 }
 0xde1   :  { %2359 = vmatpush3.bf16.msra.mxu1 %v2561_v4  ;;  %2193 = vmatprep.mubr.msk.f32.mxu1 %vm2496_vm2, %v2497_v8 }
 0xde2   :  { %2360 = vmatprep.subr.bf16.mxu1 %v2495_v0 }
 0xde5   :  { %2362 = vmatpush3.bf16.msra.mxu1 %v2582_v10 }
 0xde6   :  { %2371 = vmatprep.subr.bf16.mxu1 %v2495_v0 }
 0xeb3   :  { %v746_v2 = vpop.f32.mrb[6].mxu1 }
 0xeb4   :  { %v750_v3 = vadd.f32 %v746_v2, %v178_v61  ;;  %v2173_v5 = vpop.f32.mrb[7].mxu1 }
 0xeb6   :  { %v751_v6 = vmul.f32 %v750_v3, %v2605_v18 }
 0xeb8   :  { %2451 = vtanh.f32 %v751_v6 }
 0xec2   :  { %v2452_v7 = vpop.eup %2451 }
 0xec3   :  { %v753_v4 = vmul.f32 %v2452_v7, %v2605_v18 }
 0xec5   :  { %v754_v9 = vadd.f32 %v753_v4, %v2609_v24 }
 0xec7   :  { %757 = vrot.lane.b32.xlu0 %v754_v9, %s2499_s3  ;;  %v755_v12 = vmul.f32 %v754_v9, %v668_v55 }
 0xf39   :  { %v758_v11 = vpop.permute.xlu0 %757 }
 0xf3a   :  { %v760_v10 = vmul.f32 %v758_v11, %v754_v9 }
 0xf3c   :  { %762 = vrot.lane.b32.xlu1 %v760_v10, %s2499_s3 }
 0xfae   :  { %v763_v13 = vpop.permute.xlu1 %762 }
 0xfaf   :  { %v765_v60 = vadd.f32 %v763_v13, %v755_v12 }
 0xfb1   :  { %2453 = vtanh.f32 %v765_v60 }
 0xfbb   :  { %v2454_v19 = vpop.eup %2453 }
 0xfbc   :  { %768 = vrot.lane.b32.xlu0 %v2454_v19, %s2499_s3 }
0x102e   :  { %v769_v20 = vpop.permute.xlu0 %768 }
0x102f   :  { %v771_v21 = vmul.f32 %v769_v20, %v754_v9 }
0x1031   :  { %773 = vrot.lane.b32.xlu1 %v771_v21, %s2500_s23 }
0x10a3   :  { %v774_v27 = vpop.permute.xlu1 %773 }
0x10a4   :  { %2183 = vmatmul.mubr.msk.f32.vlgmr.msra.gmra.mrb[12].mxu0 %vm191_vm4, %v774_v27 }
0x10a5   :  { %2366 = vmatpush3.bf16.msra.mxu0 %v2363_v17  ;;  %2204 = vmatprep.mubr.msk.f32.mxu0 %vm191_vm4, %v2617_v35  ;;  %v183_v35 = vadd.f32 %v2602_v14, %v2667_v63 }
0x10a6   :  { %2368 = vmatprep.subr.bf16.mxu0 %v2367_v26 }
0x10a9   :  { %2370 = vmatpush3.bf16.msra.mxu0 %v2367_v26 }
0x10aa   :  { %2383 = vmatprep.subr.bf16.mxu0 %v2495_v0 }
0x10ac   :  { %2205 = vmatmul.mubr.msk.f32.vlgmr.msra.gmra.mrb[14].mxu0 %vm191_vm4, %v2669_v1 }
0x10ad   :  { %2207 = vmatprep.mubr.msk.f32.mxu0 %vm191_vm4, %v2687_v23  ;;  %2385 = vmatpush3.bf16.msra.mxu0 %v2790_v47 }
0x10ae   :  { %2386 = vmatprep.subr.bf16.mxu0 %v2495_v0 }
0x10b0   :  { %2208 = vmatmul.mubr.msk.f32.gmra.mrb[16].mxu0 %vm191_vm4, %v2705_v42 }
0x10b1   :  { %2210 = vmatprep.mubr.msk.f32.mxu0 %vm191_vm4, %v677_v59  ;;  %2388 = vmatpush3.bf16.msra.mxu0 %v2800_v50 }
0x10b2   :  { %2395 = vmatprep.subr.bf16.mxu0 %v2495_v0 }
0x10b4   :  { %2211 = vmatmul.mubr.msk.f32.gmra.mrb[18].mxu0 %vm191_vm4, %v774_v27 }
0x1177   :  { %v843_v28 = vpop.f32.mrb[12].mxu0 }
0x1178   :  { %v847_v29 = vadd.f32 %v843_v28, %v183_v35  ;;  %v2184_v30 = vpop.f32.mrb[13].mxu0 }
0x117a   :  { %v848_v31 = vmul.f32 %v847_v29, %v2605_v18 }
0x117c   :  { %2455 = vtanh.f32 %v848_v31 }
0x117f   :  { %v2766_v1 = vpop.f32.mrb[14].mxu0 }
0x1180   :  { %v1052_v32 = vpop.f32.mrb[15].mxu0  ;;  %v1058_v30 = vadd.f32 %v2766_v1, %v2825_v58 }
0x1181   :  { %v1053_v59 = vadd.f32 %v2825_v58, %v1052_v32 }
0x1183   :  { %v2768_v23 = vpop.f32.mrb[16].mxu0 }
0x1184   :  { %v2770_v33 = vpop.f32.mrb[17].mxu0 }
0x1186   :  { %v2456_v34 = vpop.eup %2455 }
0x1187   :  { %v2772_v36 = vpop.f32.mrb[18].mxu0  ;;  %v850_v37 = vmul.f32 %v2456_v34, %v2605_v18 }
0x1188   :  { %v2775_v38 = vpop.f32.mrb[19].mxu0 }
0x1189   :  { %v851_v63 = vadd.f32 %v850_v37, %v2609_v24 }
0x118b   :  { %854 = vrot.lane.b32.xlu0 %v851_v63, %s2499_s3  ;;  %v852_v41 = vmul.f32 %v851_v63, %v765_v60 }
0x11fd   :  { %v855_v39 = vpop.permute.xlu0 %854 }
0x11fe   :  { %v857_v40 = vmul.f32 %v855_v39, %v851_v63 }
0x1200   :  { %859 = vrot.lane.b32.xlu1 %v857_v40, %s2499_s3 }
0x1272   :  { %v860_v42 = vpop.permute.xlu1 %859 }
0x1273   :  { %v2780_v43 = vadd.f32 %v860_v42, %v852_v41 }
0x1275   :  { %2457 = vtanh.f32 %v2780_v43 }
0x127f   :  { %v2458_v44 = vpop.eup %2457 }
0x1280   :  { %865 = vrot.lane.b32.xlu0 %v2458_v44, %s2499_s3 }
0x12f2   :  { %v866_v51 = vpop.permute.xlu0 %865 }
0x12f3   :  { %v868_v52 = vmul.f32 %v866_v51, %v851_v63 }
0x12f5   :  { %870 = vrot.lane.b32.xlu1 %v868_v52, %s2500_s23 }
0x1367   :  { %v871_v53 = vpop.permute.xlu1 %870 }
0x1368   :  { %2194 = vmatmul.mubr.msk.f32.vlgmr.msra.gmra.mrb[8].mxu1 %vm191_vm4, %v871_v53  ;;  %2213 = vmatprep.mubr.msk.f32.mxu0 %vm191_vm4, %v871_v53 }
0x1369   :  { %2373 = vmatpush3.bf16.msra.mxu1 %v2790_v47  ;;  %2224 = vmatprep.mubr.msk.f32.mxu1 %vm2496_vm2, %v2497_v8 }
0x136a   :  { %2374 = vmatprep.subr.bf16.mxu1 %v2495_v0 }
0x136d   :  { %2376 = vmatpush3.bf16.msra.mxu1 %v2800_v50 }
0x136e   :  { %2377 = vmatprep.subr.bf16.mxu1 %v2495_v0 }
0x1370   :  { %2225 = vmatmul.mubr.f32.vlgmr.msra.gmra.mrb[10].mxu1 %v2497_v8 }
0x1371   :  { %2379 = vmatpush3.bf16.msra.mxu1 %v2790_v47  ;;  %2235 = vmatprep.mubr.msk.f32.mxu1 %vm2496_vm2, %v2497_v8 }
0x1372   :  { %2380 = vmatprep.subr.bf16.mxu1 %v2495_v0 }
0x1375   :  { %2382 = vmatpush3.bf16.msra.mxu1 %v2800_v50 }
0x1376   :  { %2389 = vmatprep.subr.bf16.mxu1 %v2495_v0 }
0x143b   :  { %v940_v55 = vpop.f32.mrb[8].mxu1 }
0x143c   :  { %v944_v56 = vadd.f32 %v940_v55, %v188_v54  ;;  %v2195_v57 = vpop.f32.mrb[9].mxu1  ;;  %v1063_v54 = vadd.f32 %v2825_v58, %v2770_v33 }
0x143e   :  { %v945_v9 = vmul.f32 %v944_v56, %v2605_v18 }
0x1443   :  { %v1157_v61 = vpop.f32.mrb[10].mxu1 }
0x1444   :  { %v1161_v2 = vadd.f32 %v1157_v61, %v1053_v59  ;;  %v2226_v3 = vpop.f32.mrb[11].mxu1 }
0x1446   :  { %v1162_v5 = vmul.f32 %v1161_v2, %v2605_v18 }
0x1448   :  { %2459 = vtanh.f32 %v1162_v5 }
0x1449   :  { %2461 = vtanh.f32 %v945_v9 }
0x1452   :  { %v2460_v6 = vpop.eup %2459 }
0x1453   :  { %v1164_v7 = vmul.f32 %v2460_v6, %v2605_v18  ;;  %v2462_v13 = vpop.eup %2461 }
0x1454   :  { %v947_v60 = vmul.f32 %v2462_v13, %v2605_v18 }
0x1455   :  { %v1165_v14 = vadd.f32 %v1164_v7, %v2609_v24 }
0x1456   :  { %v948_v16 = vadd.f32 %v947_v60, %v2609_v24 }
0x1457   :  { %1168 = vrot.lane.b32.xlu0 %v1165_v14, %s2499_s3  ;;  %v1166_v11 = vmul.f32 0.0, %v1165_v14 }
0x1458   :  { %v949_v25 = vmul.f32 %v948_v16, %v2780_v43 }
0x14c9   :  { %v1169_v62 = vpop.permute.xlu0 %1168 }
0x14ca   :  { %v1171_v4 = vmul.f32 %v1169_v62, %v1165_v14 }
0x14cc   :  { %1173 = vrot.lane.b32.xlu1 %v1171_v4, %s2499_s3 }
0x153e   :  { %v1174_v10 = vpop.permute.xlu1 %1173 }
0x153f   :  { %v1176_v12 = vadd.f32 %v1174_v10, %v1166_v11  ;;  %v1068_v10 = vadd.f32 %v2768_v23, %v2825_v58 }
0x1541   :  { %2463 = vtanh.f32 %v1176_v12 }
0x154b   :  { %v2464_v15 = vpop.eup %2463 }
0x154c   :  { %1179 = vrot.lane.b32.xlu0 %v2464_v15, %s2499_s3 }
0x1550   :  { %951 = vrot.lane.b32.xlu0 %v948_v16, %s2499_s3 }
0x15be   :  { %v1180_v17 = vpop.permute.xlu0 %1179 }
0x15bf   :  { %v1182_v19 = vmul.f32 %v1180_v17, %v1165_v14 }
0x15c1   :  { %1184 = vrot.lane.b32.xlu1 %v1182_v19, %s2500_s23 }
0x15c2   :  { %v952_v20 = vpop.permute.xlu0 %951 }
0x15c3   :  { %v954_v21 = vmul.f32 %v952_v20, %v948_v16 }
0x15c5   :  { %956 = vrot.lane.b32.xlu0 %v954_v21, %s2499_s3 }
0x1633   :  { %v1185_v22 = vpop.permute.xlu1 %1184 }
0x1634   :  { %2236 = vmatmul.mubr.msk.f32.vlgmr.msra.gmra.mrb[12].mxu1 %vm191_vm4, %v1185_v22 }
0x1635   :  { %2391 = vmatpush3.bf16.msra.mxu1 %v2790_v47  ;;  %2257 = vmatprep.mubr.msk.f32.mxu1 %vm2496_vm2, %v2497_v8 }
0x1636   :  { %2392 = vmatprep.subr.bf16.mxu1 %v2495_v0 }
0x1637   :  { %v957_v26 = vpop.permute.xlu0 %956 }
0x1638   :  { %v959_v27 = vadd.f32 %v957_v26, %v949_v25 }
0x1639   :  { %2394 = vmatpush3.bf16.msra.mxu1 %v2800_v50 }
0x163a   :  { %2465 = vtanh.f32 %v959_v27  ;;  %2401 = vmatprep.subr.bf16.mxu1 %v2495_v0 }
0x1644   :  { %v2466_v35 = vpop.eup %2465 }
0x1645   :  { %962 = vrot.lane.b32.xlu0 %v2466_v35, %s2499_s3 }
0x16b7   :  { %v963_v28 = vpop.permute.xlu0 %962 }
0x16b8   :  { %v965_v29 = vmul.f32 %v963_v28, %v948_v16 }
0x16ba   :  { %982 = vrot.lane.b32.xlu0 %v965_v29, %s2500_s23  ;;  %v1073_v29 = vadd.f32 %v2825_v58, %v2775_v38 }
0x1707   :  { %v1254_v31 = vpop.f32.mrb[12].mxu1 }
0x1708   :  { %v1258_v32 = vadd.f32 %v1254_v31, %v1058_v30  ;;  %v2237_v34 = vpop.f32.mrb[13].mxu1 }
0x170a   :  { %v1259_v37 = vmul.f32 %v1258_v32, %v2605_v18 }
0x170c   :  { %2467 = vtanh.f32 %v1259_v37 }
0x1716   :  { %v2468_v63 = vpop.eup %2467 }
0x1717   :  { %v1261_v39 = vmul.f32 %v2468_v63, %v2605_v18 }
0x1719   :  { %v1262_v40 = vadd.f32 %v1261_v39, %v2609_v24 }
0x171b   :  { %1265 = vrot.lane.b32.xlu1 %v1262_v40, %s2499_s3  ;;  %v1263_v45 = vmul.f32 %v1262_v40, %v1176_v12 }
0x172c   :  { %v983_v41 = vpop.permute.xlu0 %982 }
0x172d   :  { %2214 = vmatmul.mubr.msk.f32.gmra.mrb[20].mxu0 %vm191_vm4, %v983_v41 }
0x172e   :  { %2246 = vmatprep.mubr.msk.f32.mxu0 %vm2496_vm2, %v2497_v8 }
0x178d   :  { %v1266_v1 = vpop.permute.xlu1 %1265 }
0x178e   :  { %v1268_v42 = vmul.f32 %v1266_v1, %v1262_v40 }
0x1790   :  { %1270 = vrot.lane.b32.xlu1 %v1268_v42, %s2499_s3 }
0x1800   :  { %v2860_v43 = vpop.f32.mrb[20].mxu0 }
0x1801   :  { %v2862_v44 = vpop.f32.mrb[21].mxu0 }
0x1802   :  { %v1271_v46 = vpop.permute.xlu1 %1270 }
0x1803   :  { %v1273_v48 = vadd.f32 %v1271_v46, %v1263_v45 }
0x1805   :  { %2469 = vtanh.f32 %v1273_v48 }
0x180f   :  { %v2470_v49 = vpop.eup %2469 }
0x1810   :  { %1276 = vrot.lane.b32.xlu1 %v2470_v49, %s2499_s3 }
0x1882   :  { %v1277_v51 = vpop.permute.xlu1 %1276 }
0x1883   :  { %v1279_v52 = vmul.f32 %v1277_v51, %v1262_v40  ;;  %v1078_v51 = vadd.f32 %v2772_v36, %v2825_v58 }
0x1885   :  { %1281 = vrot.lane.b32.xlu1 %v1279_v52, %s2500_s23 }
0x18f7   :  { %v1282_v53 = vpop.permute.xlu1 %1281 }
0x18f8   :  { %2247 = vmatmul.mubr.msk.f32.vlgmr.msra.gmra.mrb[22].mxu0 %vm191_vm4, %v1282_v53 }
0x18f9   :  { %2397 = vmatpush3.bf16.msra.mxu0 %v2790_v47  ;;  %2268 = vmatprep.mubr.msk.f32.mxu0 %vm2496_vm2, %v2497_v8 }
0x18fa   :  { %2398 = vmatprep.subr.bf16.mxu0 %v2495_v0 }
0x18fd   :  { %2400 = vmatpush3.bf16.msra.mxu0 %v2800_v50 }
0x18fe   :  { %2407 = vmatprep.subr.bf16.mxu0 %v2495_v0 }
0x19cb   :  { %v1351_v55 = vpop.f32.mrb[22].mxu0 }
0x19cc   :  { %v1355_v56 = vadd.f32 %v1351_v55, %v1063_v54  ;;  %v2248_v57 = vpop.f32.mrb[23].mxu0 }
0x19ce   :  { %v1356_v59 = vmul.f32 %v1355_v56, %v2605_v18 }
0x19d0   :  { %2471 = vtanh.f32 %v1356_v59 }
0x19da   :  { %v2472_v61 = vpop.eup %2471 }
0x19db   :  { %v1358_v2 = vmul.f32 %v2472_v61, %v2605_v18 }
0x19dd   :  { %v1359_v3 = vadd.f32 %v1358_v2, %v2609_v24 }
0x19df   :  { %1362 = vrot.lane.b32.xlu0 %v1359_v3, %s2499_s3  ;;  %v1360_v7 = vmul.f32 %v1359_v3, %v1273_v48 }
0x1a51   :  { %v1363_v5 = vpop.permute.xlu0 %1362 }
0x1a52   :  { %v1365_v6 = vmul.f32 %v1363_v5, %v1359_v3 }
0x1a54   :  { %1367 = vrot.lane.b32.xlu1 %v1365_v6, %s2499_s3 }
0x1ac6   :  { %v1368_v14 = vpop.permute.xlu1 %1367 }
0x1ac7   :  { %v1370_v33 = vadd.f32 %v1368_v14, %v1360_v7  ;;  %v1083_v14 = vadd.f32 %v2825_v58, %v2862_v44 }
0x1ac9   :  { %2473 = vtanh.f32 %v1370_v33 }
0x1ad3   :  { %v2474_v62 = vpop.eup %2473 }
0x1ad4   :  { %1373 = vrot.lane.b32.xlu0 %v2474_v62, %s2499_s3 }
0x1b46   :  { %v1374_v4 = vpop.permute.xlu0 %1373 }
0x1b47   :  { %v1376_v9 = vmul.f32 %v1374_v4, %v1359_v3 }
0x1b49   :  { %1378 = vrot.lane.b32.xlu1 %v1376_v9, %s2500_s23 }
0x1bbb   :  { %v1379_v11 = vpop.permute.xlu1 %1378 }
0x1bbc   :  { %2258 = vmatmul.mubr.msk.f32.vlgmr.msra.gmra.mrb[14].mxu1 %vm191_vm4, %v1379_v11 }
0x1bbd   :  { %2403 = vmatpush3.bf16.msra.mxu1 %v2790_v47  ;;  %2279 = vmatprep.mubr.msk.f32.mxu1 %vm2496_vm2, %v2497_v8 }
0x1bbe   :  { %2404 = vmatprep.subr.bf16.mxu1 %v2495_v0 }
0x1bc1   :  { %2406 = vmatpush3.bf16.msra.mxu1 %v2800_v50 }
0x1bc2   :  { %2413 = vmatprep.subr.bf16.mxu1 %v2495_v0 }
0x1c8f   :  { %v1448_v12 = vpop.f32.mrb[14].mxu1 }
0x1c90   :  { %v1452_v13 = vadd.f32 %v1448_v12, %v1068_v10  ;;  %v2259_v60 = vpop.f32.mrb[15].mxu1 }
0x1c92   :  { %v1453_v15 = vmul.f32 %v1452_v13, %v2605_v18 }
0x1c94   :  { %2475 = vtanh.f32 %v1453_v15 }
0x1c9e   :  { %v2476_v16 = vpop.eup %2475 }
0x1c9f   :  { %v1455_v17 = vmul.f32 %v2476_v16, %v2605_v18 }
0x1ca1   :  { %v1456_v19 = vadd.f32 %v1455_v17, %v2609_v24 }
0x1ca3   :  { %1459 = vrot.lane.b32.xlu0 %v1456_v19, %s2499_s3  ;;  %v1457_v22 = vmul.f32 %v1456_v19, %v1370_v33 }
0x1d15   :  { %v1460_v20 = vpop.permute.xlu0 %1459 }
0x1d16   :  { %v1462_v21 = vmul.f32 %v1460_v20, %v1456_v19 }
0x1d18   :  { %1464 = vrot.lane.b32.xlu1 %v1462_v21, %s2499_s3  ;;  %v1088_v21 = vadd.f32 %v2860_v43, %v2825_v58  ;;  %v1862_v43 = vld [vmem:[%s2979_s7] sm:$0xff] }
0x1d8a   :  { %v1465_v25 = vpop.permute.xlu1 %1464 }
0x1d8b   :  { %v1467_v23 = vadd.f32 %v1465_v25, %v1457_v22 }
0x1d8d   :  { %2477 = vtanh.f32 %v1467_v23 }
0x1d97   :  { %v2478_v26 = vpop.eup %2477 }
0x1d98   :  { %1470 = vrot.lane.b32.xlu0 %v2478_v26, %s2499_s3 }
0x1e0a   :  { %v1471_v27 = vpop.permute.xlu0 %1470 }
0x1e0b   :  { %v1473_v35 = vmul.f32 %v1471_v27, %v1456_v19 }
0x1e0d   :  { %1475 = vrot.lane.b32.xlu1 %v1473_v35, %s2500_s23 }
0x1e7f   :  { %v1476_v28 = vpop.permute.xlu1 %1475 }
0x1e80   :  { %2269 = vmatmul.mubr.msk.f32.vlgmr.msra.gmra.mrb[24].mxu0 %vm191_vm4, %v1476_v28 }
0x1e81   :  { %2409 = vmatpush3.bf16.msra.mxu0 %v2790_v47  ;;  %2290 = vmatprep.mubr.msk.f32.mxu0 %vm2496_vm2, %v2497_v8 }
0x1e82   :  { %2410 = vmatprep.subr.bf16.mxu0 %v2495_v0 }
0x1e85   :  { %2412 = vmatpush3.bf16.msra.mxu0 %v2800_v50 }
0x1e86   :  { %2419 = vmatprep.subr.bf16.mxu0 %v2495_v0 }
0x1f53   :  { %v1545_v30 = vpop.f32.mrb[24].mxu0 }
0x1f54   :  { %v1549_v31 = vadd.f32 %v1545_v30, %v1073_v29  ;;  %v2270_v32 = vpop.f32.mrb[25].mxu0 }
0x1f56   :  { %v1550_v34 = vmul.f32 %v1549_v31, %v2605_v18 }
0x1f58   :  { %2479 = vtanh.f32 %v1550_v34 }
0x1f62   :  { %v2480_v37 = vpop.eup %2479 }
0x1f63   :  { %v1552_v63 = vmul.f32 %v2480_v37, %v2605_v18  ;;  %v1865_v37 = vld [vmem:[%s2979_s7 + $0x18] sm:$0xff] }
0x1f65   :  { %v1553_v39 = vadd.f32 %v1552_v63, %v2609_v24 }
0x1f67   :  { %1556 = vrot.lane.b32.xlu0 %v1553_v39, %s2499_s3  ;;  %v1554_v1 = vmul.f32 %v1553_v39, %v1467_v23 }
0x1fd9   :  { %v1557_v40 = vpop.permute.xlu0 %1556 }
0x1fda   :  { %v1559_v41 = vmul.f32 %v1557_v40, %v1553_v39 }
0x1fdc   :  { %1561 = vrot.lane.b32.xlu1 %v1559_v41, %s2499_s3 }
0x204e   :  { %v1562_v42 = vpop.permute.xlu1 %1561 }
0x204f   :  { %v1564_v38 = vadd.f32 %v1562_v42, %v1554_v1  ;;  %v1986_v42 = vld [vmem:[%s2980_s8] ss:$0 sm:$0xff] }
0x2051   :  { %2481 = vtanh.f32 %v1564_v38 }
0x205b   :  { %v2482_v45 = vpop.eup %2481 }
0x205c   :  { %1567 = vrot.lane.b32.xlu0 %v2482_v45, %s2499_s3 }
0x20ce   :  { %v1568_v46 = vpop.permute.xlu0 %1567 }
0x20cf   :  { %v1570_v48 = vmul.f32 %v1568_v46, %v1553_v39 }
0x20d1   :  { %1572 = vrot.lane.b32.xlu1 %v1570_v48, %s2500_s23 }
0x2143   :  { %v1573_v49 = vpop.permute.xlu1 %1572 }
0x2144   :  { %2280 = vmatmul.mubr.msk.f32.vlgmr.msra.gmra.mrb[16].mxu1 %vm191_vm4, %v1573_v49 }
0x2145   :  { %2415 = vmatpush3.bf16.msra.mxu1 %v2790_v47  ;;  %2301 = vmatprep.mubr.msk.f32.mxu1 %vm2496_vm2, %v2497_v8 }
0x2146   :  { %2416 = vmatprep.subr.bf16.mxu1 %v2495_v0 }
0x2149   :  { %2418 = vmatpush3.bf16.msra.mxu1 %v2800_v50 }
0x2217   :  { %v1642_v52 = vpop.f32.mrb[16].mxu1 }
0x2218   :  { %v1646_v53 = vadd.f32 %v1642_v52, %v1078_v51  ;;  %v2281_v54 = vpop.f32.mrb[17].mxu1 }
0x221a   :  { %v1647_v55 = vmul.f32 %v1646_v53, %v2605_v18 }
0x221c   :  { %2483 = vtanh.f32 %v1647_v55 }
0x2226   :  { %v2484_v56 = vpop.eup %2483 }
0x2227   :  { %v1649_v57 = vmul.f32 %v2484_v56, %v2605_v18 }
0x2229   :  { %v1650_v47 = vadd.f32 %v1649_v57, %v2609_v24 }
0x222b   :  { %1653 = vrot.lane.b32.xlu0 %v1650_v47, %s2499_s3  ;;  %v1651_v50 = vmul.f32 %v1650_v47, %v1564_v38 }
0x229d   :  { %v1654_v59 = vpop.permute.xlu0 %1653 }
0x229e   :  { %v1656_v61 = vmul.f32 %v1654_v59, %v1650_v47 }
0x22a0   :  { %1658 = vrot.lane.b32.xlu1 %v1656_v61, %s2499_s3 }
0x2312   :  { %v1659_v2 = vpop.permute.xlu1 %1658 }
0x2313   :  { %v1661_v36 = vadd.f32 %v1659_v2, %v1651_v50 }
0x2315   :  { %2485 = vtanh.f32 %v1661_v36 }
0x231f   :  { %v2486_v3 = vpop.eup %2485 }
0x2320   :  { %1664 = vrot.lane.b32.xlu0 %v2486_v3, %s2499_s3 }
0x2392   :  { %v1665_v5 = vpop.permute.xlu0 %1664 }
0x2393   :  { %v1667_v6 = vmul.f32 %v1665_v5, %v1650_v47 }
0x2395   :  { %1669 = vrot.lane.b32.xlu1 %v1667_v6, %s2500_s23 }
0x2407   :  { %v1670_v7 = vpop.permute.xlu1 %1669 }
0x2408   :  { %2291 = vmatmul.mubr.msk.f32.vlgmr.msra.gmra.mrb[26].mxu0 %vm191_vm4, %v1670_v7 }
0x2409   :  { %2312 = vmatprep.mubr.msk.f32.mxu0 %vm2496_vm2, %v2497_v8 }
0x24db   :  { %v1739_v33 = vpop.f32.mrb[26].mxu0 }
0x24dc   :  { %v1743_v62 = vadd.f32 %v1739_v33, %v1083_v14  ;;  %v2292_v4 = vpop.f32.mrb[27].mxu0 }
0x24de   :  { %v1744_v9 = vmul.f32 %v1743_v62, %v2605_v18 }
0x24e0   :  { %2487 = vtanh.f32 %v1744_v9 }
0x24ea   :  { %v2488_v11 = vpop.eup %2487 }
0x24eb   :  { %v1746_v10 = vmul.f32 %v2488_v11, %v2605_v18 }
0x24ed   :  { %v1747_v12 = vadd.f32 %v1746_v10, %v2609_v24 }
0x24ef   :  { %1750 = vrot.lane.b32.xlu0 %v1747_v12, %s2499_s3  ;;  %v1748_v8 = vmul.f32 %v1747_v12, %v1661_v36 }
0x2561   :  { %v1751_v13 = vpop.permute.xlu0 %1750 }
0x2562   :  { %v1753_v60 = vmul.f32 %v1751_v13, %v1747_v12 }
0x2564   :  { %1755 = vrot.lane.b32.xlu1 %v1753_v60, %s2499_s3 }
0x25d6   :  { %v1756_v15 = vpop.permute.xlu1 %1755 }
0x25d7   :  { %v1758_v44 = vadd.f32 %v1756_v15, %v1748_v8 }
0x25d9   :  { %2489 = vtanh.f32 %v1758_v44 }
0x25e3   :  { %v2490_v16 = vpop.eup %2489 }
0x25e4   :  { %1761 = vrot.lane.b32.xlu0 %v2490_v16, %s2499_s3 }
0x2656   :  { %v1762_v17 = vpop.permute.xlu0 %1761 }
0x2657   :  { %v1764_v19 = vmul.f32 %v1762_v17, %v1747_v12 }
0x2659   :  { %1766 = vrot.lane.b32.xlu1 %v1764_v19, %s2500_s23 }
0x26cb   :  { %v1767_v20 = vpop.permute.xlu1 %1766 }
0x26cc   :  { %2302 = vmatmul.mubr.msk.f32.vlgmr.msra.gmra.mrb[18].mxu1 %vm191_vm4, %v1767_v20 }
0x279f   :  { %v1836_v22 = vpop.f32.mrb[18].mxu1 }
0x27a0   :  { %v1840_v25 = vadd.f32 %v1836_v22, %v1088_v21  ;;  %v2303_v23 = vpop.f32.mrb[19].mxu1 }
0x27a2   :  { %v1841_v26 = vmul.f32 %v1840_v25, %v2605_v18 }
0x27a4   :  { %2491 = vtanh.f32 %v1841_v26 }
0x27ae   :  { %v2492_v27 = vpop.eup %2491 }
0x27af   :  { %v1843_v35 = vmul.f32 %v2492_v27, %v2605_v18  ;;  %v1863_v18 = vld [vmem:[%s2979_s7 + $0x8] sm:$0xff] }
0x27b0   :  { %v2420_v34 = vpack.c.bf16 %v1863_v18, %v1862_v43 }
0x27b1   :  { %v1844_v28 = vadd.f32 %v1843_v35, %v2609_v24  ;;  %v1864_v24 = vld [vmem:[%s2979_s7 + $0x10] sm:$0xff] }
0x27b2   :  { %2421 = vmatpush3.bf16.msra.mxu0 %v2420_v34  ;;  %v2423_v63 = vpack.c.bf16 %v1865_v37, %v1864_v24 }
0x27b3   :  { %1847 = vrot.lane.b32.xlu0 %v1844_v28, %s2499_s3  ;;  %v1845_v31 = vmul.f32 %v1844_v28, %v1758_v44  ;;  %2422 = vmatprep.subr.bf16.mxu0 %v2495_v0 }
0x27b6   :  { %2424 = vmatpush3.bf16.msra.mxu0 %v2423_v63 }
0x2825   :  { %v1848_v29 = vpop.permute.xlu0 %1847 }
0x2826   :  { %v1850_v30 = vmul.f32 %v1848_v29, %v1844_v28 }
0x2828   :  { %1852 = vrot.lane.b32.xlu1 %v1850_v30, %s2499_s3 }
0x289a   :  { %v1853_v32 = vpop.permute.xlu1 %1852 }
0x289b   :  { %v1855_v58 = vadd.f32 %v1853_v32, %v1845_v31 }
0x289d   :  { %2493 = vtanh.f32 %v1855_v58 }
0x28a7   :  { %v2494_v39 = vpop.eup %2493 }
0x28a8   :  { %1858 = vrot.lane.b32.xlu0 %v2494_v39, %s2499_s3 }
0x291a   :  { %v1859_v40 = vpop.permute.xlu0 %1858 }
0x291b   :  { %v1861_v41 = vmul.f32 %v1859_v40, %v1844_v28 }
0x291d   :  { %1874 = vrot.lane.b32.xlu1 %v1861_v41, %s2500_s23 }
0x298f   :  { %v1875_v1 = vpop.permute.xlu1 %1874 }
0x2990   :  { %2313 = vmatmul.mubr.msk.f32.vlgmr.msra.gmra.mrb[28].mxu0 %vm191_vm4, %v1875_v1 }
0x2a63   :  { %v1944_v38 = vpop.f32.mrb[28].mxu0 }
0x2a64   :  { %v1945_v45 = vadd.f32 %v1986_v42, %v1944_v38  ;;  %v2314_v46 = vpop.f32.mrb[29].mxu0 }
0x2a66   :  { %1948 = vst.msk [vmem:[%s2981_s9] sm:$0xff] %vm57_vm1, %v1945_v45 }

</bundles_post_ra>
